<compile_context>
chip_gen: v7x
topology: tpu7x:2x2x1
jax: 0.10.0
libtpu: 0.0.40
codegen_flags: <defaults>
</compile_context>

<pallas_src>
import functools
import math

import jax
import jax.numpy as jnp
from jax import lax
from jax.experimental import pallas as pl
from jax.experimental.pallas import tpu as pltpu


# ------------------------- per-generation sizing ------------------------------

def _query_vmem_bytes():
    try:
        cap = int(pltpu.get_tpu_info().vmem_capacity_bytes)
        if cap > 0:
            return cap
    except Exception:
        pass
    return 64 * 1024 * 1024            # conservative (v7x-sized) fallback


_VMEM_BYTES = _query_vmem_bytes()
_VMEM_LIMIT = (_VMEM_BYTES * 3) // 4   # leave headroom for double-buffering
_BIG_VMEM = _VMEM_BYTES >= 96 * 1024 * 1024   # v5e/v6e (128 MiB) vs v7x (64 MiB)
_TM_MAX = 512 if _BIG_VMEM else 256
_TK_MAX = 1024 if _BIG_VMEM else 512
_TN_MAX = 512


def _round_up(x, m):
    return (x + m - 1) // m * m


def _lane_tile(c, cap=512):
    """Lane-dim tile: full extent when small, else a 128-multiple divisor."""
    if c <= cap:
        return c
    for t in (512, 256, 128):
        if t <= cap and c % t == 0:
            return t
    return c


def _m_tile(m, cap):
    """Row (sublane) tile and padded extent."""
    t = min(cap, _round_up(m, 8))
    return t, _round_up(m, t)


def _l_tile(l, cap=512):
    if l <= cap:
        return l
    for t in (512, 256, 128, 64, 32, 16, 8):
        if l % t == 0:
            return t
    return l


def _chunk_tile(lc, cap=16):
    """8-step chunks per grid L-block for the scan (cap*8 timesteps per block)."""
    if lc <= cap:
        return lc
    for t in (16, 8, 4, 2):
        if lc % t == 0:
            return t
    return lc


# ------------------------ in-kernel elementwise helpers -----------------------

def _silu(x):
    return x * jax.nn.sigmoid(x)


def _softplus(x):
    # Stable softplus; matches torch.nn.functional.softplus.
    return jnp.maximum(x, 0.0) + jnp.log(1.0 + jnp.exp(-jnp.abs(x)))


def _erf(x):
    # Abramowitz & Stegun 7.1.26 (|err| < 1.5e-7): exact-GELU without an erf
    # lowering; only exp/mul/add so it stays on VPU/EUP slots.
    p = 0.3275911
    a1, a2, a3, a4, a5 = (0.254829592, -0.284496736, 1.421413741,
                          -1.453152027, 1.061405429)
    ax = jnp.abs(x)
    t = 1.0 / (1.0 + p * ax)
    poly = ((((a5 * t + a4) * t + a3) * t + a2) * t + a1) * t
    y = 1.0 - poly * jnp.exp(-ax * ax)
    return jnp.where(x >= 0.0, y, -y)


def _gelu_exact(x):
    return 0.5 * x * (1.0 + _erf(x * 0.7071067811865476))


# ----------------------------- Pallas kernels ---------------------------------

def _linear_f32_kernel(x_ref, w_ref, b_ref, o_ref):
    """o = x @ w + b, f32 out; accumulate directly into the resident o block."""
    k = pl.program_id(2)

    @pl.when(k == 0)
    def _():
        o_ref[...] = jnp.zeros_like(o_ref)

    o_ref[...] += jnp.dot(x_ref[...].astype(jnp.bfloat16),
                          w_ref[...].astype(jnp.bfloat16),
                          preferred_element_type=jnp.float32)

    @pl.when(k == pl.num_programs(2) - 1)
    def _():
        o_ref[...] += b_ref[...]


def _linear_acc_kernel(x_ref, w_ref, b_ref, o_ref, acc_ref):
    """o = (x @ w + b) cast to o.dtype (bf16 path); f32 accumulator scratch."""
    k = pl.program_id(2)

    @pl.when(k == 0)
    def _():
        acc_ref[...] = jnp.zeros_like(acc_ref)

    acc_ref[...] += jnp.dot(x_ref[...].astype(jnp.bfloat16),
                            w_ref[...].astype(jnp.bfloat16),
                            preferred_element_type=jnp.float32)

    @pl.when(k == pl.num_programs(2) - 1)
    def _():
        o_ref[...] = (acc_ref[...] + b_ref[...]).astype(o_ref.dtype)


def linear(x, w, b=None, out_dtype=jnp.float32,
           tm_max=None, tn_max=None, tk_max=None):
    M, K = x.shape
    N = w.shape[1]
    tm_max = _TM_MAX if tm_max is None else tm_max
    tn_max = _TN_MAX if tn_max is None else tn_max
    tk_max = _TK_MAX if tk_max is None else tk_max
    if b is None:
        b = jnp.zeros((N,), jnp.float32)
    tm, Mp = _m_tile(M, tm_max)
    tn = N if N <= tn_max else tn_max
    Np = _round_up(N, tn)
    tk = K if K <= tk_max else tk_max
    Kp = _round_up(K, tk)
    xp = x if (Mp == M and Kp == K) else jnp.pad(x, ((0, Mp - M), (0, Kp - K)))
    wp = w if (Kp == K and Np == N) else jnp.pad(w, ((0, Kp - K), (0, Np - N)))
    bp = b if Np == N else jnp.pad(b, (0, Np - N))
    grid = (Mp // tm, Np // tn, Kp // tk)
    if out_dtype == jnp.float32:
        kernel, scratch = _linear_f32_kernel, []
    else:
        kernel, scratch = _linear_acc_kernel, [pltpu.VMEM((tm, tn), jnp.float32)]
    # TODO(synk): on v5e, sweeping pipeline_mode=pl.Buffered(3) on the weight
    # BlockSpec can hide exposed K-axis weight DMA; default double-buffer kept.
    out = pl.pallas_call(
        kernel,
        out_shape=jax.ShapeDtypeStruct((Mp, Np), out_dtype),
        grid=grid,
        in_specs=[
            pl.BlockSpec((tm, tk), lambda i, j, k: (i, k)),
            pl.BlockSpec((tk, tn), lambda i, j, k: (k, j)),
            pl.BlockSpec((1, tn), lambda i, j, k: (0, j)),
        ],
        out_specs=pl.BlockSpec((tm, tn), lambda i, j, k: (i, j)),
        scratch_shapes=scratch,
        compiler_params=pltpu.CompilerParams(
            dimension_semantics=("parallel", "parallel", "arbitrary"),
            vmem_limit_bytes=_VMEM_LIMIT),
    )(xp, wp, bp.reshape(1, Np))
    if Mp != M or Np != N:
        out = out[:M, :N]
    return out


def _inproj_kernel(x_ref, w_ref, xz_ref, res_ref, acc_ref, *, d_inner):
    """Fused in_proj: y = x @ W, split into (xz, res) at d_inner on finalize."""
    k = pl.program_id(1)

    @pl.when(k == 0)
    def _():
        acc_ref[...] = jnp.zeros_like(acc_ref)

    acc_ref[...] += jnp.dot(x_ref[...].astype(jnp.bfloat16),
                            w_ref[...].astype(jnp.bfloat16),
                            preferred_element_type=jnp.float32)

    @pl.when(k == pl.num_programs(1) - 1)
    def _():
        acc = acc_ref[...]
        xz_ref[...] = acc[:, :d_inner]
        res_ref[...] = acc[:, d_inner:]


def in_proj_split(x, w, d_inner, tm_max=256, tk_max=None):
    M, K = x.shape
    n2 = w.shape[1]                                     # 2 * d_inner
    tk_max = _TK_MAX if tk_max is None else tk_max
    tm, Mp = _m_tile(M, tm_max)
    tk = K if K <= tk_max else tk_max
    Kp = _round_up(K, tk)
    xp = x if (Mp == M and Kp == K) else jnp.pad(x, ((0, Mp - M), (0, Kp - K)))
    wp = w if Kp == K else jnp.pad(w, ((0, Kp - K), (0, 0)))
    xz, res = pl.pallas_call(
        functools.partial(_inproj_kernel, d_inner=d_inner),
        out_shape=(jax.ShapeDtypeStruct((Mp, d_inner), jnp.float32),
                   jax.ShapeDtypeStruct((Mp, d_inner), jnp.float32)),
        grid=(Mp // tm, Kp // tk),
        in_specs=[
            pl.BlockSpec((tm, tk), lambda i, k: (i, k)),
            pl.BlockSpec((tk, n2), lambda i, k: (k, 0)),
        ],
        out_specs=(pl.BlockSpec((tm, d_inner), lambda i, k: (i, 0)),
                   pl.BlockSpec((tm, d_inner), lambda i, k: (i, 0))),
        scratch_shapes=[pltpu.VMEM((tm, n2), jnp.float32)],
        compiler_params=pltpu.CompilerParams(
            dimension_semantics=("parallel", "arbitrary"),
            vmem_limit_bytes=_VMEM_LIMIT),
    )(xp, wp)
    if Mp != M:
        xz, res = xz[:M], res[:M]
    return xz, res


def _conv_silu_kernel(x_ref, w_ref, b_ref, o_ref, hist_ref):
    """Depthwise causal conv1d (+bias) then SiLU.

    Grid (B, C-tiles, L-blocks); the causal K-1 history is carried in a VMEM
    scratch across the sequential L axis, so no padded-input copy and bounded
    VMEM at long L.
    """
    l = pl.program_id(2)
    K = w_ref.shape[0]
    lblk = o_ref.shape[0]

    @pl.when(l == 0)
    def _():
        hist_ref[...] = jnp.zeros_like(hist_ref)

    xv = x_ref[...].astype(jnp.float32)                       # (lblk, cn)
    xw = jnp.concatenate([hist_ref[...], xv], axis=0)         # (lblk + K - 1, cn)
    acc = jnp.zeros(o_ref.shape, jnp.float32) + b_ref[...]
    for k in range(K):                                        # K tiny & static
        acc = acc + w_ref[k:k + 1, :] * xw[k:k + lblk, :]
    o_ref[...] = acc * jax.nn.sigmoid(acc)
    hist_ref[...] = xv[lblk - (K - 1):, :]


def depthwise_conv_silu(x, w_kc, b):
    Bsz, L, C = x.shape
    K = w_kc.shape[0]
    cn = _lane_tile(C)
    lblk = _l_tile(L)
    return pl.pallas_call(
        _conv_silu_kernel,
        out_shape=jax.ShapeDtypeStruct((Bsz, L, C), jnp.float32),
        grid=(Bsz, C // cn, L // lblk),
        in_specs=[
            pl.BlockSpec((pl.Squeezed(), lblk, cn), lambda i, c, l: (i, l, c)),
            pl.BlockSpec((K, cn), lambda i, c, l: (0, c)),
            pl.BlockSpec((1, cn), lambda i, c, l: (0, c)),
        ],
        out_specs=pl.BlockSpec((pl.Squeezed(), lblk, cn), lambda i, c, l: (i, l, c)),
        scratch_shapes=[pltpu.VMEM((K - 1, cn), jnp.float32)],
        compiler_params=pltpu.CompilerParams(
            dimension_semantics=("parallel", "parallel", "arbitrary"),
            vmem_limit_bytes=_VMEM_LIMIT),
    )(x, w_kc, b.reshape(1, C))


def _xdt_kernel(xc_ref, wx_ref, wdt_ref, bdt_ref, delta_ref, b_ref, c_ref,
                *, dt_rank, d_state):
    """Fused x_proj -> (delta_lr, B, C), dt_proj + softplus; outputs pre-split."""
    xdbl = jnp.dot(xc_ref[...].astype(jnp.bfloat16), wx_ref[...].astype(jnp.bfloat16),
                   preferred_element_type=jnp.float32)
    b_ref[...] = xdbl[:, dt_rank:dt_rank + d_state]
    c_ref[...] = xdbl[:, dt_rank + d_state:]
    dlr = xdbl[:, :dt_rank]
    d = jnp.dot(dlr.astype(jnp.bfloat16), wdt_ref[...].astype(jnp.bfloat16),
                preferred_element_type=jnp.float32) + bdt_ref[...]
    delta_ref[...] = _softplus(d)


def xproj_dtproj(xc, wx, wdt, bdt, dt_rank, d_state, tm_max=256):
    M, d_inner = xc.shape
    n_out = wx.shape[1]                                 # dt_rank + 2*d_state
    tm, Mp = _m_tile(M, tm_max)
    xp = xc if Mp == M else jnp.pad(xc, ((0, Mp - M), (0, 0)))
    delta, bmat, cmat = pl.pallas_call(
        functools.partial(_xdt_kernel, dt_rank=dt_rank, d_state=d_state),
        out_shape=(jax.ShapeDtypeStruct((Mp, d_inner), jnp.float32),
                   jax.ShapeDtypeStruct((Mp, d_state), jnp.float32),
                   jax.ShapeDtypeStruct((Mp, d_state), jnp.float32)),
        grid=(Mp // tm,),
        in_specs=[
            pl.BlockSpec((tm, d_inner), lambda i: (i, 0)),
            pl.BlockSpec((d_inner, n_out), lambda i: (0, 0)),
            pl.BlockSpec((dt_rank, d_inner), lambda i: (0, 0)),
            pl.BlockSpec((1, d_inner), lambda i: (0, 0)),
        ],
        out_specs=(pl.BlockSpec((tm, d_inner), lambda i: (i, 0)),
                   pl.BlockSpec((tm, d_state), lambda i: (i, 0)),
                   pl.BlockSpec((tm, d_state), lambda i: (i, 0))),
        compiler_params=pltpu.CompilerParams(
            dimension_semantics=("parallel",),
            vmem_limit_bytes=_VMEM_LIMIT),
    )(xp, wx, wdt, bdt.reshape(1, d_inner))
    if Mp != M:
        delta, bmat, cmat = delta[:M], bmat[:M], cmat[:M]
    return delta, bmat, cmat


def _ssm_scan_kernel(u_ref, dt_ref, z_ref, bt_ref, ct_ref, at_ref, d_ref,
                     y_ref, s_ref):
    """Mamba selective scan for one (batch, channel-tile, L-block) grid cell.

    u/dt/z/y : (cblk, 8, dn) chunk-major, bt/ct : (cblk, N, 8) chunk-major with
    per-step columns on lanes, at : (N, dn) (= A^T with A = -exp(A_log)),
    d : (1, dn). State s : (N, dn) scratch carried across the L-block axis.
    The chunk loop is a fori_loop (bounded live ranges); the 8-step inner body
    is statically unrolled; exp(dt*A) for the whole chunk is hoisted off the
    serial recurrence so only a VPU FMA + XLU sublane reduce sits on it.
    """
    @pl.when(pl.program_id(2) == 0)
    def _():
        s_ref[...] = jnp.zeros_like(s_ref)

    a_t = at_ref[...]                                   # hoisted, loop-invariant
    d_vec = d_ref[...]
    n_chunks = u_ref.shape[0]

    def chunk(c, s):
        u_c = u_ref[c]                                  # (8, dn)
        dt_c = dt_ref[c]
        z_c = z_ref[c]
        b_c = bt_ref[c]                                 # (N, 8)
        c_c = ct_ref[c]
        dA = jnp.exp(dt_c[:, None, :] * a_t[None, :, :])   # (8, N, dn), EUP batched
        dBu = dt_c * u_c                                    # (8, dn)
        rows = []
        for j in range(8):                              # static 8-step unroll
            # s <- exp(dt*A) * s + B * (dt * u)         (VPU; no MXU matvec)
            s = dA[j] * s + b_c[:, j:j + 1] * dBu[j:j + 1, :]
            rows.append(jnp.sum(c_c[:, j:j + 1] * s, axis=0, keepdims=True))
        y = jnp.concatenate(rows, axis=0)               # (8, dn)
        y_ref[c] = (y + u_c * d_vec) * _silu(z_c)       # +u*D skip, SiLU gate
        return s

    s_ref[...] = lax.fori_loop(0, n_chunks, chunk, s_ref[...])


def selective_scan(u, delta, z, b, c, a_t, d):
    Bsz, L, Din = u.shape
    N = a_t.shape[0]
    assert L % 8 == 0
    Lc = L // 8
    # Narrower lane tiles than the matmuls: keeps the recurrence's vreg working
    # set (s, a_t, dA chunk) out of spill territory and gives >=2 parallel grid
    # cells for v7x's two TensorCores.
    dn = _lane_tile(Din, cap=(256 if N <= 8 else 128))
    cblk = _chunk_tile(Lc)
    u4 = u.reshape(Bsz, Lc, 8, Din)
    dt4 = delta.reshape(Bsz, Lc, 8, Din)
    z4 = z.reshape(Bsz, Lc, 8, Din)
    b4 = jnp.swapaxes(b.reshape(Bsz, Lc, 8, N), 2, 3)   # (B, Lc, N, 8)
    c4 = jnp.swapaxes(c.reshape(Bsz, Lc, 8, N), 2, 3)
    act_spec = pl.BlockSpec((pl.Squeezed(), cblk, 8, dn),
                            lambda bi, ci, li: (bi, li, 0, ci))
    bc_spec = pl.BlockSpec((pl.Squeezed(), cblk, N, 8),
                           lambda bi, ci, li: (bi, li, 0, 0))
    y4 = pl.pallas_call(
        _ssm_scan_kernel,
        out_shape=jax.ShapeDtypeStruct((Bsz, Lc, 8, Din), jnp.float32),
        grid=(Bsz, Din // dn, Lc // cblk),
        in_specs=[act_spec, act_spec, act_spec, bc_spec, bc_spec,
                  pl.BlockSpec((N, dn), lambda bi, ci, li: (0, ci)),
                  pl.BlockSpec((1, dn), lambda bi, ci, li: (0, ci))],
        out_specs=act_spec,
        scratch_shapes=[pltpu.VMEM((N, dn), jnp.float32)],
        compiler_params=pltpu.CompilerParams(
            dimension_semantics=("parallel", "parallel", "arbitrary"),
            vmem_limit_bytes=_VMEM_LIMIT),
    )(u4, dt4, z4, b4, c4, a_t, d.reshape(1, Din))
    return y4.reshape(Bsz, L, Din)


def _moe_experts_kernel(x_ref, g_ref, w1_ref, b1_ref, w2_ref, b2_ref, o_ref, acc_ref):
    """Fused ff1+GELU+ff2 with gated accumulation over the expert grid axis.

    out[i] = sum_e gate[i, e] * (GELU(x @ W1_e + b1_e) @ W2_e + b2_e)
    Expert axis e and hidden-tile axis hb are reductions into the f32 acc
    scratch; the bf16 output block is written once at the last (e, hb) step.
    """
    e = pl.program_id(1)
    hb = pl.program_id(2)

    @pl.when(jnp.logical_and(e == 0, hb == 0))
    def _():
        acc_ref[...] = jnp.zeros_like(acc_ref)

    g = g_ref[...]                                      # (tm, 1) gate weight, expert e
    hid = jnp.dot(x_ref[...].astype(jnp.bfloat16), w1_ref[...].astype(jnp.bfloat16),
                  preferred_element_type=jnp.float32) + b1_ref[...]
    hid = _gelu_exact(hid)
    y = jnp.dot(hid.astype(jnp.bfloat16), w2_ref[...].astype(jnp.bfloat16),
                preferred_element_type=jnp.float32)

    @pl.when(hb == 0)
    def _():
        acc_ref[...] += g * b2_ref[...]

    acc_ref[...] += g * y

    @pl.when(jnp.logical_and(e == pl.num_programs(1) - 1,
                             hb == pl.num_programs(2) - 1))
    def _():
        o_ref[...] = acc_ref[...].astype(o_ref.dtype)


def moe_experts(x, gate, w1, b1, w2, b2, tm_max=None):
    # TODO(synk): dead-expert skipping (pl.when on prefetched occupancy flags)
    # would cut MXU FLOPs by ~E under top-1 routing; kept dense for fidelity.
    M, dim = x.shape
    E, _, H = w1.shape
    tm_max = _TM_MAX if tm_max is None else tm_max
    tm, Mp = _m_tile(M, tm_max)
    ht = _lane_tile(H)
    xp = x if Mp == M else jnp.pad(x, ((0, Mp - M), (0, 0)))
    gp = gate if Mp == M else jnp.pad(gate, ((0, Mp - M), (0, 0)))
    g_t = jnp.swapaxes(gp, 0, 1).reshape(E, Mp, 1)      # gate column per expert
    out = pl.pallas_call(
        _moe_experts_kernel,
        out_shape=jax.ShapeDtypeStruct((Mp, dim), jnp.bfloat16),
        grid=(Mp // tm, E, H // ht),
        in_specs=[
            pl.BlockSpec((tm, dim), lambda i, e, h: (i, 0)),
            pl.BlockSpec((pl.Squeezed(), tm, 1), lambda i, e, h: (e, i, 0)),
            pl.BlockSpec((pl.Squeezed(), dim, ht), lambda i, e, h: (e, 0, h)),
            pl.BlockSpec((pl.Squeezed(), 1, ht), lambda i, e, h: (e, 0, h)),
            pl.BlockSpec((pl.Squeezed(), ht, dim), lambda i, e, h: (e, h, 0)),
            pl.BlockSpec((pl.Squeezed(), 1, dim), lambda i, e, h: (e, 0, 0)),
        ],
        out_specs=pl.BlockSpec((tm, dim), lambda i, e, h: (i, 0)),
        scratch_shapes=[pltpu.VMEM((tm, dim), jnp.float32)],
        compiler_params=pltpu.CompilerParams(
            dimension_semantics=("parallel", "arbitrary", "arbitrary"),
            vmem_limit_bytes=_VMEM_LIMIT),
    )(xp, g_t, w1, b1, w2, b2)
    return out if Mp == M else out[:M]


def _rmsnorm_head_kernel(x_ref, g_ref, w_ref, b_ref, o_ref, *, scale):
    x = x_ref[...].astype(jnp.float32)
    ss = jnp.sum(x * x, axis=-1, keepdims=True)
    inv = jax.lax.rsqrt(jnp.maximum(ss, 1e-24))          # == F.normalize eps clamp
    xn = (x * inv) * (scale * g_ref[...])                # zeta RMSNorm: x/||x|| * sqrt(D) * g
    o_ref[...] = jnp.dot(xn.astype(jnp.bfloat16), w_ref[...].astype(jnp.bfloat16),
                         preferred_element_type=jnp.float32) + b_ref[...]


def rmsnorm_head(x, g, w, b, tm_max=None, tn_max=None):
    M, D = x.shape
    V = w.shape[1]
    tm_max = _TM_MAX if tm_max is None else tm_max
    tn_max = _TN_MAX if tn_max is None else tn_max
    tm, Mp = _m_tile(M, tm_max)
    tn = V if V <= tn_max else tn_max
    Vp = _round_up(V, tn)
    xp = x if Mp == M else jnp.pad(x, ((0, Mp - M), (0, 0)))
    wp = w if Vp == V else jnp.pad(w, ((0, 0), (0, Vp - V)))
    bp = b if Vp == V else jnp.pad(b, (0, Vp - V))
    out = pl.pallas_call(
        functools.partial(_rmsnorm_head_kernel, scale=math.sqrt(D)),
        out_shape=jax.ShapeDtypeStruct((Mp, Vp), jnp.float32),
        grid=(Mp // tm, Vp // tn),
        in_specs=[
            pl.BlockSpec((tm, D), lambda i, j: (i, 0)),
            pl.BlockSpec((1, D), lambda i, j: (0, 0)),
            pl.BlockSpec((D, tn), lambda i, j: (0, j)),
            pl.BlockSpec((1, tn), lambda i, j: (0, j)),
        ],
        out_specs=pl.BlockSpec((tm, tn), lambda i, j: (i, j)),
        compiler_params=pltpu.CompilerParams(
            dimension_semantics=("parallel", "parallel"),
            vmem_limit_bytes=_VMEM_LIMIT),
    )(xp, g.reshape(1, D), wp, bp.reshape(1, Vp))
    if Mp != M or Vp != V:
        out = out[:M, :V]
    return out


# ------------------------- parameter initialization --------------------------

def _init_linear(key, fan_in, fan_out, bias=True, dtype=jnp.float32):
    kw, kb = jax.random.split(key)
    bound = 1.0 / math.sqrt(fan_in)
    w = jax.random.uniform(kw, (fan_in, fan_out), jnp.float32, -bound, bound).astype(dtype)
    if bias:
        b = jax.random.uniform(kb, (fan_out,), jnp.float32, -bound, bound)
    else:
        b = jnp.zeros((fan_out,), jnp.float32)
    return w, b


def _init_mamba(key, dim, d_state, expand, d_conv=4):
    d_inner = dim * expand
    dt_rank = math.ceil(dim / 16)
    ks = jax.random.split(key, 6)
    in_w, _ = _init_linear(ks[0], dim, 2 * d_inner, bias=False, dtype=jnp.bfloat16)
    cb = 1.0 / math.sqrt(d_conv)                        # depthwise: fan_in = 1 * d_conv
    conv_w = jax.random.uniform(ks[1], (d_conv, d_inner), jnp.float32, -cb, cb)
    conv_b = jax.random.uniform(ks[2], (d_inner,), jnp.float32, -cb, cb)
    xproj_w, _ = _init_linear(ks[3], d_inner, dt_rank + 2 * d_state, bias=False,
                              dtype=jnp.bfloat16)
    dt_w, dt_b = _init_linear(ks[4], dt_rank, d_inner, bias=True, dtype=jnp.bfloat16)
    out_w, _ = _init_linear(ks[5], d_inner, dim, bias=False, dtype=jnp.bfloat16)
    # A_log[d, n] = log(n+1) => A = -exp(A_log); stored transposed (N, Din), f32.
    a = jnp.tile(jnp.arange(1, d_state + 1, dtype=jnp.float32)[:, None], (1, d_inner))
    return dict(in_w=in_w, conv_w=conv_w, conv_b=conv_b, xproj_w=xproj_w,
                dt_w=dt_w, dt_b=dt_b, out_w=out_w,
                A_t=-a, D=jnp.ones((d_inner,), jnp.float32))


def _init_moe(key, dim, num_experts, mult=4):
    hidden = dim * mult
    kg, ke = jax.random.split(key)
    gate_w, gate_b = _init_linear(kg, dim, num_experts, bias=True, dtype=jnp.bfloat16)
    w1s, b1s, w2s, b2s = [], [], [], []
    for _ in range(num_experts):
        k1, k2, ke = jax.random.split(ke, 3)
        w1, b1 = _init_linear(k1, dim, hidden, bias=True, dtype=jnp.bfloat16)
        w2, b2 = _init_linear(k2, hidden, dim, bias=True, dtype=jnp.bfloat16)
        w1s.append(w1); b1s.append(b1); w2s.append(w2); b2s.append(b2)
    return dict(gate_w=gate_w, gate_b=gate_b,
                ff1_w=jnp.stack(w1s), ff1_b=jnp.stack(b1s)[:, None, :],
                ff2_w=jnp.stack(w2s), ff2_b=jnp.stack(b2s)[:, None, :])


def init_viper(key, config):
    dim, depth, vocab = config["dim"], config["depth"], config["num_tokens"]
    k_emb, kb, k_head = jax.random.split(key, 3)
    emb = jax.random.normal(k_emb, (vocab, dim), jnp.float32)
    blocks = []
    for _ in range(depth):                              # MoEMamba: `depth` MoEMambaBlocks
        inner = []
        for _ in range(depth):                          # each stacks `depth` (mamba, moe) pairs
            km, ko, kb = jax.random.split(kb, 3)
            inner.append(dict(
                mamba=_init_mamba(km, dim, config["expert_dimension"], config["expand"]),
                moe=_init_moe(ko, dim, config["num_experts"]),
            ))
        blocks.append(inner)
    hw, hb = _init_linear(k_head, dim, vocab, bias=True, dtype=jnp.bfloat16)
    head = dict(g=jnp.ones((dim,), jnp.float32), w=hw, b=hb)
    return dict(emb=emb, blocks=blocks, head=head)


# ------------------------------- forward pass ---------------------------------

def mamba_block_forward(p, x):
    Bsz, L, dim = x.shape
    M = Bsz * L
    d_inner = p["conv_w"].shape[1]
    d_state = p["A_t"].shape[0]
    dt_rank = p["dt_w"].shape[0]

    xr = x.reshape(M, dim)
    xz, res = in_proj_split(xr, p["in_w"], d_inner)             # (M, d_inner) f32 x2

    xc = depthwise_conv_silu(xz.reshape(Bsz, L, d_inner),
                             p["conv_w"], p["conv_b"])          # (B, L, d_inner) f32

    delta, bmat, cmat = xproj_dtproj(xc.reshape(M, d_inner), p["xproj_w"],
                                     p["dt_w"], p["dt_b"], dt_rank, d_state)

    y = selective_scan(xc, delta.reshape(Bsz, L, d_inner),
                       res.reshape(Bsz, L, d_inner),
                       bmat.reshape(Bsz, L, d_state),
                       cmat.reshape(Bsz, L, d_state),
                       p["A_t"], p["D"])
    out = linear(y.reshape(M, d_inner), p["out_w"], out_dtype=jnp.bfloat16)
    return out.reshape(Bsz, L, dim)


def switch_moe_forward(p, x):
    Bsz, L, dim = x.shape
    M = Bsz * L
    E = p["ff1_w"].shape[0]
    xr = x.reshape(M, dim)
    # TODO(synk): the gate softmax/argmax/one_hot/normalize glue could be fused
    # into one small Pallas kernel; kept in XLA since the arrays are (B, L, E)
    # with tiny E and the batch-axis denom couples M tiles.
    logits = linear(xr, p["gate_w"], p["gate_b"]).reshape(Bsz, L, E)
    scores = jax.nn.softmax(logits, axis=-1)
    mask = jax.nn.one_hot(jnp.argmax(scores, axis=-1), E, dtype=scores.dtype)
    masked = scores * mask                                      # top-1 switch gate
    denom = jnp.sum(masked, axis=0, keepdims=True) + 1e-6
    gate = (masked / denom * float(Bsz)).reshape(M, E)          # capacity = 1.0 * batch
    # TODO(synk): third-party SwitchGate uses an ill-defined 3-D scatter for its mask;
    # the documented top-1 intent is reproduced here instead.
    out = moe_experts(xr, gate, p["ff1_w"], p["ff1_b"], p["ff2_w"], p["ff2_b"])
    return out.reshape(Bsz, L, dim)


def viper_forward(params, input_ids):
    Bsz, L = input_ids.shape
    Lp = _round_up(L, 8)                                        # pad once at model entry
    x = params["emb"][input_ids]                                # embedding gather (glue)
    if Lp != L:
        x = jnp.pad(x, ((0, 0), (0, Lp - L), (0, 0)))           # causal model: safe to pad tail
    for moe_mamba_block in params["blocks"]:
        for layer in moe_mamba_block:
            x = mamba_block_forward(layer["mamba"], x)
            x = switch_moe_forward(layer["moe"], x)
    B2, L2, dim = x.shape
    logits = rmsnorm_head(x.reshape(B2 * L2, dim), params["head"]["g"],
                          params["head"]["w"], params["head"]["b"])
    logits = logits.reshape(B2, L2, -1)
    return logits[:, :L]


# ----------------------------------- main -------------------------------------

if __name__ == "__main__":
    config = dict(num_tokens=64, dim=32, depth=2, num_experts=4,
                  expert_dimension=8,   # d_state
                  expand=2, dim_head=16)
    key = jax.random.PRNGKey(0)
    k_param, k_data = jax.random.split(key)
    params = init_viper(k_param, config)
    input_ids = jax.random.randint(k_data, (2, 8), 1, config["num_tokens"], dtype=jnp.int32)

    logits = jax.jit(viper_forward)(params, input_ids)
    logits = jax.block_until_ready(logits)
    assert logits.shape == (2, 8, config["num_tokens"]), logits.shape
    assert bool(jnp.all(jnp.isfinite(logits)))
    print("KERNEL_OK")
</pallas_src>

<mosaic_0001>
module attributes {stable_mosaic.version = 11 : i64} {
  func.func @_inproj_kernel(%arg0: i32, %arg1: i32, %arg2: memref<16x32xf32, #tpu.memory_space<vmem>>, %arg3: memref<32x128xbf16, #tpu.memory_space<vmem>>, %arg4: memref<16x64xf32, #tpu.memory_space<vmem>>, %arg5: memref<16x64xf32, #tpu.memory_space<vmem>>, %arg6: memref<16x128xf32, #tpu.memory_space<vmem>>) attributes {dimension_semantics = [#tpu.dimension_semantics<parallel>, #tpu.dimension_semantics<arbitrary>], iteration_bounds = array<i64: 1, 1>, scalar_prefetch = 0 : i64, scratch_operands = 1 : i64, tpu.core_type = #tpu.core_type<tc>, window_params = [{transform_indices = @transform_0, window_bounds = array<i64: 16, 32>}, {transform_indices = @transform_1, window_bounds = array<i64: 32, 128>}, {transform_indices = @transform_2, window_bounds = array<i64: 16, 64>}, {transform_indices = @transform_3, window_bounds = array<i64: 16, 64>}]} {
    %c0_i32 = arith.constant 0 : i32
    %0 = arith.cmpi eq, %arg1, %c0_i32 : i32
    %1 = arith.extui %0 : i1 to i32
    %c0_i32_0 = arith.constant 0 : i32
    %2 = arith.cmpi ne, %1, %c0_i32_0 : i32
    scf.if %2 {
      %cst_10 = arith.constant 0.000000e+00 : f32
      %13 = vector.broadcast %cst_10 : f32 to vector<16x128xf32>
      %c0_11 = arith.constant 0 : index
      %c0_12 = arith.constant 0 : index
      %14 = vector.load %arg6[%c0_11, %c0_12] : memref<16x128xf32, #tpu.memory_space<vmem>>, vector<16x128xf32>
      tpu.vector_store %arg6[%c0_11, %c0_12], %13 {strides = array<i32>} : memref<16x128xf32, #tpu.memory_space<vmem>>, vector<16x128xf32>,
    } else {
    }
    %c0 = arith.constant 0 : index
    %c0_1 = arith.constant 0 : index
    %3 = vector.load %arg6[%c0, %c0_1] : memref<16x128xf32, #tpu.memory_space<vmem>>, vector<16x128xf32>
    %c0_2 = arith.constant 0 : index
    %c0_3 = arith.constant 0 : index
    %4 = vector.load %arg2[%c0_2, %c0_3] : memref<16x32xf32, #tpu.memory_space<vmem>>, vector<16x32xf32>
    %5 = arith.truncf %4 : vector<16x32xf32> to vector<16x32xbf16>
    %c0_4 = arith.constant 0 : index
    %c0_5 = arith.constant 0 : index
    %6 = vector.load %arg3[%c0_4, %c0_5] : memref<32x128xbf16, #tpu.memory_space<vmem>>, vector<32x128xbf16>
    %cst = arith.constant dense<0.000000e+00> : vector<16x128xf32>
    %7 = tpu.matmul %5, %6, %cst {dimension_numbers = #tpu.dot_dimension_numbers<[1], [0], [0], [1], [0, 0, 1, 1], [], []>} : vector<16x32xbf16>, vector<32x128xbf16>, vector<16x128xf32> -> vector<16x128xf32>
    %8 = arith.addf %3, %7 : vector<16x128xf32>
    %c0_6 = arith.constant 0 : index
    %c0_7 = arith.constant 0 : index
    %9 = vector.load %arg6[%c0_6, %c0_7] : memref<16x128xf32, #tpu.memory_space<vmem>>, vector<16x128xf32>
    tpu.vector_store %arg6[%c0_6, %c0_7], %8 {strides = array<i32>} : memref<16x128xf32, #tpu.memory_space<vmem>>, vector<16x128xf32>,
    %c0_i32_8 = arith.constant 0 : i32
    %10 = arith.cmpi eq, %arg1, %c0_i32_8 : i32
    %11 = arith.extui %10 : i1 to i32
    %c0_i32_9 = arith.constant 0 : i32
    %12 = arith.cmpi ne, %11, %c0_i32_9 : i32
    scf.if %12 {
      %c0_10 = arith.constant 0 : index
      %c0_11 = arith.constant 0 : index
      %13 = vector.load %arg6[%c0_10, %c0_11] : memref<16x128xf32, #tpu.memory_space<vmem>>, vector<16x128xf32>
      %14 = vector.extract_strided_slice %13 {offsets = [0, 0], sizes = [16, 64], strides = [1, 1]} : vector<16x128xf32> to vector<16x64xf32>
      %c0_12 = arith.constant 0 : index
      %c0_13 = arith.constant 0 : index
      %15 = vector.load %arg4[%c0_12, %c0_13] : memref<16x64xf32, #tpu.memory_space<vmem>>, vector<16x64xf32>
      tpu.vector_store %arg4[%c0_12, %c0_13], %14 {strides = array<i32>} : memref<16x64xf32, #tpu.memory_space<vmem>>, vector<16x64xf32>,
      %16 = vector.extract_strided_slice %13 {offsets = [0, 64], sizes = [16, 64], strides = [1, 1]} : vector<16x128xf32> to vector<16x64xf32>
      %c0_14 = arith.constant 0 : index
      %c0_15 = arith.constant 0 : index
      %17 = vector.load %arg5[%c0_14, %c0_15] : memref<16x64xf32, #tpu.memory_space<vmem>>, vector<16x64xf32>
      tpu.vector_store %arg5[%c0_14, %c0_15], %16 {strides = array<i32>} : memref<16x64xf32, #tpu.memory_space<vmem>>, vector<16x64xf32>,
    } else {
    }
    return
  }
  func.func @transform_0(%arg0: i32, %arg1: i32) -> (i32, i32) {
    %c0_i32 = arith.constant 0 : i32
    return %arg0, %arg1 : i32, i32
  }
  func.func @transform_1(%arg0: i32, %arg1: i32) -> (i32, i32) {
    %c0_i32 = arith.constant 0 : i32
    %c0_i32_0 = arith.constant 0 : i32
    return %arg1, %c0_i32 : i32, i32
  }
  func.func @transform_2(%arg0: i32, %arg1: i32) -> (i32, i32) {
    %c0_i32 = arith.constant 0 : i32
    %c0_i32_0 = arith.constant 0 : i32
    return %arg0, %c0_i32 : i32, i32
  }
  func.func @transform_3(%arg0: i32, %arg1: i32) -> (i32, i32) {
    %c0_i32 = arith.constant 0 : i32
    %c0_i32_0 = arith.constant 0 : i32
    return %arg0, %c0_i32 : i32, i32
  }
}

module attributes {stable_mosaic.version = 11 : i64} {
  func.func @_conv_silu_kernel(%arg0: i32, %arg1: i32, %arg2: i32, %arg3: memref<1x8x64xf32, #tpu.memory_space<vmem>>, %arg4: memref<4x64xf32, #tpu.memory_space<vmem>>, %arg5: memref<1x64xf32, #tpu.memory_space<vmem>>, %arg6: memref<1x8x64xf32, #tpu.memory_space<vmem>>, %arg7: memref<3x64xf32, #tpu.memory_space<vmem>>) attributes {dimension_semantics = [#tpu.dimension_semantics<parallel>, #tpu.dimension_semantics<parallel>, #tpu.dimension_semantics<arbitrary>], iteration_bounds = array<i64: 2, 1, 1>, scalar_prefetch = 0 : i64, scratch_operands = 1 : i64, tpu.core_type = #tpu.core_type<tc>, window_params = [{transform_indices = @transform_0, window_bounds = array<i64: 1, 8, 64>}, {transform_indices = @transform_1, window_bounds = array<i64: 4, 64>}, {transform_indices = @transform_2, window_bounds = array<i64: 1, 64>}, {transform_indices = @transform_3, window_bounds = array<i64: 1, 8, 64>}]} {
    %c0_i32 = arith.constant 0 : i32
    %0 = arith.cmpi eq, %arg2, %c0_i32 : i32
    %1 = arith.extui %0 : i1 to i32
    %c0_i32_0 = arith.constant 0 : i32
    %2 = arith.cmpi ne, %1, %c0_i32_0 : i32
    scf.if %2 {
      %cst_18 = arith.constant 0.000000e+00 : f32
      %42 = vector.broadcast %cst_18 : f32 to vector<3x64xf32>
      %c0_19 = arith.constant 0 : index
      %c0_20 = arith.constant 0 : index
      %43 = vector.load %arg7[%c0_19, %c0_20] : memref<3x64xf32, #tpu.memory_space<vmem>>, vector<3x64xf32>
      tpu.vector_store %arg7[%c0_19, %c0_20], %42 {strides = array<i32>} : memref<3x64xf32, #tpu.memory_space<vmem>>, vector<3x64xf32>,
    } else {
    }
    %c0 = arith.constant 0 : index
    %c0_1 = arith.constant 0 : index
    %c0_2 = arith.constant 0 : index
    %3 = vector.load %arg3[%c0, %c0_1, %c0_2] : memref<1x8x64xf32, #tpu.memory_space<vmem>>, vector<1x8x64xf32>
    %4 = vector.shape_cast %3 : vector<1x8x64xf32> to vector<8x64xf32>
    %c0_3 = arith.constant 0 : index
    %c0_4 = arith.constant 0 : index
    %5 = vector.load %arg7[%c0_3, %c0_4] : memref<3x64xf32, #tpu.memory_space<vmem>>, vector<3x64xf32>
    %6 = tpu.concatenate %5, %4 in 0 : vector<3x64xf32>, vector<8x64xf32> -> vector<11x64xf32>
    %cst = arith.constant 0.000000e+00 : f32
    %7 = vector.broadcast %cst : f32 to vector<8x64xf32>
    %c0_5 = arith.constant 0 : index
    %c0_6 = arith.constant 0 : index
    %8 = vector.load %arg5[%c0_5, %c0_6] : memref<1x64xf32, #tpu.memory_space<vmem>>, vector<1x64xf32>
    %9 = vector.broadcast %8 : vector<1x64xf32> to vector<8x64xf32>
    %10 = arith.addf %7, %9 : vector<8x64xf32>
    %c0_7 = arith.constant 0 : index
    %c0_8 = arith.constant 0 : index
    %11 = vector.load %arg4[%c0_7, %c0_8] : memref<4x64xf32, #tpu.memory_space<vmem>>, vector<1x64xf32>
    %12 = vector.extract_strided_slice %6 {offsets = [0, 0], sizes = [8, 64], strides = [1, 1]} : vector<11x64xf32> to vector<8x64xf32>
    %13 = vector.broadcast %11 : vector<1x64xf32> to vector<8x64xf32>
    %14 = arith.mulf %13, %12 : vector<8x64xf32>
    %15 = arith.addf %10, %14 : vector<8x64xf32>
    %c1 = arith.constant 1 : index
    %c0_9 = arith.constant 0 : index
    %16 = vector.load %arg4[%c1, %c0_9] : memref<4x64xf32, #tpu.memory_space<vmem>>, vector<1x64xf32>
    %17 = vector.extract_strided_slice %6 {offsets = [1, 0], sizes = [8, 64], strides = [1, 1]} : vector<11x64xf32> to vector<8x64xf32>
    %18 = vector.broadcast %16 : vector<1x64xf32> to vector<8x64xf32>
    %19 = arith.mulf %18, %17 : vector<8x64xf32>
    %20 = arith.addf %15, %19 : vector<8x64xf32>
    %c2 = arith.constant 2 : index
    %c0_10 = arith.constant 0 : index
    %21 = vector.load %arg4[%c2, %c0_10] : memref<4x64xf32, #tpu.memory_space<vmem>>, vector<1x64xf32>
    %22 = vector.extract_strided_slice %6 {offsets = [2, 0], sizes = [8, 64], strides = [1, 1]} : vector<11x64xf32> to vector<8x64xf32>
    %23 = vector.broadcast %21 : vector<1x64xf32> to vector<8x64xf32>
    %24 = arith.mulf %23, %22 : vector<8x64xf32>
    %25 = arith.addf %20, %24 : vector<8x64xf32>
    %c3 = arith.constant 3 : index
    %c0_11 = arith.constant 0 : index
    %26 = vector.load %arg4[%c3, %c0_11] : memref<4x64xf32, #tpu.memory_space<vmem>>, vector<1x64xf32>
    %27 = vector.extract_strided_slice %6 {offsets = [3, 0], sizes = [8, 64], strides = [1, 1]} : vector<11x64xf32> to vector<8x64xf32>
    %28 = vector.broadcast %26 : vector<1x64xf32> to vector<8x64xf32>
    %29 = arith.mulf %28, %27 : vector<8x64xf32>
    %30 = arith.addf %25, %29 : vector<8x64xf32>
    %31 = arith.negf %30 : vector<8x64xf32>
    %32 = math.exp %31 : vector<8x64xf32>
    %cst_12 = arith.constant 1.000000e+00 : f32
    %33 = vector.broadcast %cst_12 : f32 to vector<8x64xf32>
    %34 = arith.addf %33, %32 : vector<8x64xf32>
    %35 = arith.divf %33, %34 : vector<8x64xf32>
    %36 = arith.mulf %30, %35 : vector<8x64xf32>
    %c0_13 = arith.constant 0 : index
    %c0_14 = arith.constant 0 : index
    %c0_15 = arith.constant 0 : index
    %37 = vector.load %arg6[%c0_13, %c0_14, %c0_15] : memref<1x8x64xf32, #tpu.memory_space<vmem>>, vector<1x8x64xf32>
    %38 = vector.shape_cast %37 : vector<1x8x64xf32> to vector<8x64xf32>
    %39 = vector.shape_cast %36 : vector<8x64xf32> to vector<1x8x64xf32>
    tpu.vector_store %arg6[%c0_13, %c0_14, %c0_15], %39 {strides = array<i32>} : memref<1x8x64xf32, #tpu.memory_space<vmem>>, vector<1x8x64xf32>,
    %40 = vector.extract_strided_slice %4 {offsets = [5, 0], sizes = [3, 64], strides = [1, 1]} : vector<8x64xf32> to vector<3x64xf32>
    %c0_16 = arith.constant 0 : index
    %c0_17 = arith.constant 0 : index
    %41 = vector.load %arg7[%c0_16, %c0_17] : memref<3x64xf32, #tpu.memory_space<vmem>>, vector<3x64xf32>
    tpu.vector_store %arg7[%c0_16, %c0_17], %40 {strides = array<i32>} : memref<3x64xf32, #tpu.memory_space<vmem>>, vector<3x64xf32>,
    return
  }
  func.func @transform_0(%arg0: i32, %arg1: i32, %arg2: i32) -> (i32, i32, i32) {
    %c0_i32 = arith.constant 0 : i32
    return %arg0, %arg2, %arg1 : i32, i32, i32
  }
  func.func @transform_1(%arg0: i32, %arg1: i32, %arg2: i32) -> (i32, i32) {
    %c0_i32 = arith.constant 0 : i32
    %c0_i32_0 = arith.constant 0 : i32
    return %c0_i32, %arg1 : i32, i32
  }
  func.func @transform_2(%arg0: i32, %arg1: i32, %arg2: i32) -> (i32, i32) {
    %c0_i32 = arith.constant 0 : i32
    %c0_i32_0 = arith.constant 0 : i32
    return %c0_i32, %arg1 : i32, i32
  }
  func.func @transform_3(%arg0: i32, %arg1: i32, %arg2: i32) -> (i32, i32, i32) {
    %c0_i32 = arith.constant 0 : i32
    return %arg0, %arg2, %arg1 : i32, i32, i32
  }
}

module attributes {stable_mosaic.version = 11 : i64} {
  func.func @_xdt_kernel(%arg0: i32, %arg1: memref<16x64xf32, #tpu.memory_space<vmem>>, %arg2: memref<64x18xbf16, #tpu.memory_space<vmem>>, %arg3: memref<2x64xbf16, #tpu.memory_space<vmem>>, %arg4: memref<1x64xf32, #tpu.memory_space<vmem>>, %arg5: memref<16x64xf32, #tpu.memory_space<vmem>>, %arg6: memref<16x8xf32, #tpu.memory_space<vmem>>, %arg7: memref<16x8xf32, #tpu.memory_space<vmem>>) attributes {dimension_semantics = [#tpu.dimension_semantics<parallel>], iteration_bounds = array<i64: 1>, scalar_prefetch = 0 : i64, scratch_operands = 0 : i64, tpu.core_type = #tpu.core_type<tc>, window_params = [{transform_indices = @transform_0, window_bounds = array<i64: 16, 64>}, {pipeline_mode = #tpu.pipeline_mode<synchronous>, transform_indices = @transform_1, window_bounds = array<i64: 64, 18>}, {pipeline_mode = #tpu.pipeline_mode<synchronous>, transform_indices = @transform_2, window_bounds = array<i64: 2, 64>}, {pipeline_mode = #tpu.pipeline_mode<synchronous>, transform_indices = @transform_3, window_bounds = array<i64: 1, 64>}, {transform_indices = @transform_4, window_bounds = array<i64: 16, 64>}, {transform_indices = @transform_5, window_bounds = array<i64: 16, 8>}, {transform_indices = @transform_6, window_bounds = array<i64: 16, 8>}]} {
    %c0 = arith.constant 0 : index
    %c0_0 = arith.constant 0 : index
    %0 = vector.load %arg1[%c0, %c0_0] : memref<16x64xf32, #tpu.memory_space<vmem>>, vector<16x64xf32>
    %1 = arith.truncf %0 : vector<16x64xf32> to vector<16x64xbf16>
    %c0_1 = arith.constant 0 : index
    %c0_2 = arith.constant 0 : index
    %2 = vector.load %arg2[%c0_1, %c0_2] : memref<64x18xbf16, #tpu.memory_space<vmem>>, vector<64x18xbf16>
    %cst = arith.constant dense<0.000000e+00> : vector<16x18xf32>
    %3 = tpu.matmul %1, %2, %cst {dimension_numbers = #tpu.dot_dimension_numbers<[1], [0], [0], [1], [0, 0, 1, 1], [], []>} : vector<16x64xbf16>, vector<64x18xbf16>, vector<16x18xf32> -> vector<16x18xf32>
    %4 = vector.extract_strided_slice %3 {offsets = [0, 2], sizes = [16, 8], strides = [1, 1]} : vector<16x18xf32> to vector<16x8xf32>
    %c0_3 = arith.constant 0 : index
    %c0_4 = arith.constant 0 : index
    %5 = vector.load %arg6[%c0_3, %c0_4] : memref<16x8xf32, #tpu.memory_space<vmem>>, vector<16x8xf32>
    tpu.vector_store %arg6[%c0_3, %c0_4], %4 {strides = array<i32>} : memref<16x8xf32, #tpu.memory_space<vmem>>, vector<16x8xf32>,
    %6 = vector.extract_strided_slice %3 {offsets = [0, 10], sizes = [16, 8], strides = [1, 1]} : vector<16x18xf32> to vector<16x8xf32>
    %c0_5 = arith.constant 0 : index
    %c0_6 = arith.constant 0 : index
    %7 = vector.load %arg7[%c0_5, %c0_6] : memref<16x8xf32, #tpu.memory_space<vmem>>, vector<16x8xf32>
    tpu.vector_store %arg7[%c0_5, %c0_6], %6 {strides = array<i32>} : memref<16x8xf32, #tpu.memory_space<vmem>>, vector<16x8xf32>,
    %8 = vector.extract_strided_slice %3 {offsets = [0, 0], sizes = [16, 2], strides = [1, 1]} : vector<16x18xf32> to vector<16x2xf32>
    %9 = arith.truncf %8 : vector<16x2xf32> to vector<16x2xbf16>
    %c0_7 = arith.constant 0 : index
    %c0_8 = arith.constant 0 : index
    %10 = vector.load %arg3[%c0_7, %c0_8] : memref<2x64xbf16, #tpu.memory_space<vmem>>, vector<2x64xbf16>
    %cst_9 = arith.constant dense<0.000000e+00> : vector<16x64xf32>
    %11 = tpu.matmul %9, %10, %cst_9 {dimension_numbers = #tpu.dot_dimension_numbers<[1], [0], [0], [1], [0, 0, 1, 1], [], []>} : vector<16x2xbf16>, vector<2x64xbf16>, vector<16x64xf32> -> vector<16x64xf32>
    %c0_10 = arith.constant 0 : index
    %c0_11 = arith.constant 0 : index
    %12 = vector.load %arg4[%c0_10, %c0_11] : memref<1x64xf32, #tpu.memory_space<vmem>>, vector<1x64xf32>
    %13 = vector.broadcast %12 : vector<1x64xf32> to vector<16x64xf32>
    %14 = arith.addf %11, %13 : vector<16x64xf32>
    %cst_12 = arith.constant 0.000000e+00 : f32
    %15 = vector.broadcast %cst_12 : f32 to vector<16x64xf32>
    %16 = arith.maximumf %14, %15 : vector<16x64xf32>
    %17 = math.absf %14 : vector<16x64xf32>
    %cst_13 = arith.constant 0.000000e+00 : f32
    %18 = vector.broadcast %cst_13 : f32 to vector<16x64xf32>
    %19 = arith.subf %18, %17 : vector<16x64xf32>
    %20 = math.exp %19 : vector<16x64xf32>
    %cst_14 = arith.constant 1.000000e+00 : f32
    %21 = vector.broadcast %cst_14 : f32 to vector<16x64xf32>
    %22 = arith.addf %21, %20 : vector<16x64xf32>
    %23 = math.log %22 : vector<16x64xf32>
    %24 = arith.addf %16, %23 : vector<16x64xf32>
    %c0_15 = arith.constant 0 : index
    %c0_16 = arith.constant 0 : index
    %25 = vector.load %arg5[%c0_15, %c0_16] : memref<16x64xf32, #tpu.memory_space<vmem>>, vector<16x64xf32>
    tpu.vector_store %arg5[%c0_15, %c0_16], %24 {strides = array<i32>} : memref<16x64xf32, #tpu.memory_space<vmem>>, vector<16x64xf32>,
    return
  }
  func.func @transform_0(%arg0: i32) -> (i32, i32) {
    %c0_i32 = arith.constant 0 : i32
    %c0_i32_0 = arith.constant 0 : i32
    return %arg0, %c0_i32 : i32, i32
  }
  func.func @transform_1(%arg0: i32) -> (i32, i32) {
    %c0_i32 = arith.constant 0 : i32
    %c0_i32_0 = arith.constant 0 : i32
    %c0_i32_1 = arith.constant 0 : i32
    return %c0_i32, %c0_i32_0 : i32, i32
  }
  func.func @transform_2(%arg0: i32) -> (i32, i32) {
    %c0_i32 = arith.constant 0 : i32
    %c0_i32_0 = arith.constant 0 : i32
    %c0_i32_1 = arith.constant 0 : i32
    return %c0_i32, %c0_i32_0 : i32, i32
  }
  func.func @transform_3(%arg0: i32) -> (i32, i32) {
    %c0_i32 = arith.constant 0 : i32
    %c0_i32_0 = arith.constant 0 : i32
    %c0_i32_1 = arith.constant 0 : i32
    return %c0_i32, %c0_i32_0 : i32, i32
  }
  func.func @transform_4(%arg0: i32) -> (i32, i32) {
    %c0_i32 = arith.constant 0 : i32
    %c0_i32_0 = arith.constant 0 : i32
    return %arg0, %c0_i32 : i32, i32
  }
  func.func @transform_5(%arg0: i32) -> (i32, i32) {
    %c0_i32 = arith.constant 0 : i32
    %c0_i32_0 = arith.constant 0 : i32
    return %arg0, %c0_i32 : i32, i32
  }
  func.func @transform_6(%arg0: i32) -> (i32, i32) {
    %c0_i32 = arith.constant 0 : i32
    %c0_i32_0 = arith.constant 0 : i32
    return %arg0, %c0_i32 : i32, i32
  }
}

module attributes {stable_mosaic.version = 11 : i64} {
  func.func @_ssm_scan_kernel(%arg0: i32, %arg1: i32, %arg2: i32, %arg3: memref<1x1x8x64xf32, #tpu.memory_space<vmem>>, %arg4: memref<1x1x8x64xf32, #tpu.memory_space<vmem>>, %arg5: memref<1x1x8x64xf32, #tpu.memory_space<vmem>>, %arg6: memref<1x1x8x8xf32, #tpu.memory_space<vmem>>, %arg7: memref<1x1x8x8xf32, #tpu.memory_space<vmem>>, %arg8: memref<8x64xf32, #tpu.memory_space<vmem>>, %arg9: memref<1x64xf32, #tpu.memory_space<vmem>>, %arg10: memref<1x1x8x64xf32, #tpu.memory_space<vmem>>, %arg11: memref<8x64xf32, #tpu.memory_space<vmem>>) attributes {dimension_semantics = [#tpu.dimension_semantics<parallel>, #tpu.dimension_semantics<parallel>, #tpu.dimension_semantics<arbitrary>], iteration_bounds = array<i64: 2, 1, 1>, scalar_prefetch = 0 : i64, scratch_operands = 1 : i64, tpu.core_type = #tpu.core_type<tc>, window_params = [{transform_indices = @transform_0, window_bounds = array<i64: 1, 1, 8, 64>}, {transform_indices = @transform_1, window_bounds = array<i64: 1, 1, 8, 64>}, {transform_indices = @transform_2, window_bounds = array<i64: 1, 1, 8, 64>}, {transform_indices = @transform_3, window_bounds = array<i64: 1, 1, 8, 8>}, {transform_indices = @transform_4, window_bounds = array<i64: 1, 1, 8, 8>}, {transform_indices = @transform_5, window_bounds = array<i64: 8, 64>}, {transform_indices = @transform_6, window_bounds = array<i64: 1, 64>}, {transform_indices = @transform_7, window_bounds = array<i64: 1, 1, 8, 64>}]} {
    %c0_i32 = arith.constant 0 : i32
    %0 = arith.cmpi eq, %arg2, %c0_i32 : i32
    %1 = arith.extui %0 : i1 to i32
    %c0_i32_0 = arith.constant 0 : i32
    %2 = arith.cmpi ne, %1, %c0_i32_0 : i32
    scf.if %2 {
      %cst_35 = arith.constant 0.000000e+00 : f32
      %156 = vector.broadcast %cst_35 : f32 to vector<8x64xf32>
      %c0_36 = arith.constant 0 : index
      %c0_37 = arith.constant 0 : index
      %157 = vector.load %arg11[%c0_36, %c0_37] : memref<8x64xf32, #tpu.memory_space<vmem>>, vector<8x64xf32>
      tpu.vector_store %arg11[%c0_36, %c0_37], %156 {strides = array<i32>} : memref<8x64xf32, #tpu.memory_space<vmem>>, vector<8x64xf32>,
    } else {
    }
    %c0 = arith.constant 0 : index
    %c0_1 = arith.constant 0 : index
    %3 = vector.load %arg8[%c0, %c0_1] : memref<8x64xf32, #tpu.memory_space<vmem>>, vector<8x64xf32>
    %c0_2 = arith.constant 0 : index
    %c0_3 = arith.constant 0 : index
    %4 = vector.load %arg9[%c0_2, %c0_3] : memref<1x64xf32, #tpu.memory_space<vmem>>, vector<1x64xf32>
    %c0_4 = arith.constant 0 : index
    %c0_5 = arith.constant 0 : index
    %5 = vector.load %arg11[%c0_4, %c0_5] : memref<8x64xf32, #tpu.memory_space<vmem>>, vector<8x64xf32>
    %c0_i32_6 = arith.constant 0 : i32
    %c0_7 = arith.constant 0 : index
    %6 = arith.index_cast %c0_i32_6 : i32 to index
    %c0_8 = arith.constant 0 : index
    %c0_9 = arith.constant 0 : index
    %7 = vector.load %arg3[%c0_7, %6, %c0_8, %c0_9] : memref<1x1x8x64xf32, #tpu.memory_space<vmem>>, vector<1x1x8x64xf32>
    %8 = vector.shape_cast %7 : vector<1x1x8x64xf32> to vector<8x64xf32>
    %c0_10 = arith.constant 0 : index
    %9 = arith.index_cast %c0_i32_6 : i32 to index
    %c0_11 = arith.constant 0 : index
    %c0_12 = arith.constant 0 : index
    %10 = vector.load %arg4[%c0_10, %9, %c0_11, %c0_12] : memref<1x1x8x64xf32, #tpu.memory_space<vmem>>, vector<1x1x8x64xf32>
    %11 = vector.shape_cast %10 : vector<1x1x8x64xf32> to vector<8x64xf32>
    %c0_13 = arith.constant 0 : index
    %12 = arith.index_cast %c0_i32_6 : i32 to index
    %c0_14 = arith.constant 0 : index
    %c0_15 = arith.constant 0 : index
    %13 = vector.load %arg5[%c0_13, %12, %c0_14, %c0_15] : memref<1x1x8x64xf32, #tpu.memory_space<vmem>>, vector<1x1x8x64xf32>
    %14 = vector.shape_cast %13 : vector<1x1x8x64xf32> to vector<8x64xf32>
    %c0_16 = arith.constant 0 : index
    %15 = arith.index_cast %c0_i32_6 : i32 to index
    %c0_17 = arith.constant 0 : index
    %c0_18 = arith.constant 0 : index
    %16 = vector.load %arg6[%c0_16, %15, %c0_17, %c0_18] : memref<1x1x8x8xf32, #tpu.memory_space<vmem>>, vector<1x1x8x8xf32>
    %17 = vector.shape_cast %16 : vector<1x1x8x8xf32> to vector<8x8xf32>
    %c0_19 = arith.constant 0 : index
    %18 = arith.index_cast %c0_i32_6 : i32 to index
    %c0_20 = arith.constant 0 : index
    %c0_21 = arith.constant 0 : index
    %19 = vector.load %arg7[%c0_19, %18, %c0_20, %c0_21] : memref<1x1x8x8xf32, #tpu.memory_space<vmem>>, vector<1x1x8x8xf32>
    %20 = vector.shape_cast %19 : vector<1x1x8x8xf32> to vector<8x8xf32>
    %21 = vector.shape_cast %11 : vector<8x64xf32> to vector<8x1x64xf32>
    %22 = vector.shape_cast %3 : vector<8x64xf32> to vector<1x8x64xf32>
    %23 = vector.broadcast %21 : vector<8x1x64xf32> to vector<8x8x64xf32>
    %24 = vector.broadcast %22 : vector<1x8x64xf32> to vector<8x8x64xf32>
    %25 = arith.mulf %23, %24 : vector<8x8x64xf32>
    %26 = math.exp %25 : vector<8x8x64xf32>
    %27 = arith.mulf %11, %8 : vector<8x64xf32>
    %28 = vector.extract_strided_slice %26 {offsets = [0, 0, 0], sizes = [1, 8, 64], strides = [1, 1, 1]} : vector<8x8x64xf32> to vector<1x8x64xf32>
    %29 = vector.shape_cast %28 : vector<1x8x64xf32> to vector<8x64xf32>
    %30 = arith.mulf %29, %5 : vector<8x64xf32>
    %31 = vector.extract_strided_slice %17 {offsets = [0, 0], sizes = [8, 1], strides = [1, 1]} : vector<8x8xf32> to vector<8x1xf32>
    %32 = vector.extract_strided_slice %27 {offsets = [0, 0], sizes = [1, 64], strides = [1, 1]} : vector<8x64xf32> to vector<1x64xf32>
    %33 = vector.broadcast %31 : vector<8x1xf32> to vector<8x64xf32>
    %34 = vector.broadcast %32 : vector<1x64xf32> to vector<8x64xf32>
    %35 = arith.mulf %33, %34 : vector<8x64xf32>
    %36 = arith.addf %30, %35 : vector<8x64xf32>
    %37 = vector.extract_strided_slice %20 {offsets = [0, 0], sizes = [8, 1], strides = [1, 1]} : vector<8x8xf32> to vector<8x1xf32>
    %38 = vector.broadcast %37 : vector<8x1xf32> to vector<8x64xf32>
    %39 = arith.mulf %38, %36 : vector<8x64xf32>
    %cst = arith.constant dense<0.000000e+00> : vector<64xf32>
    %40 = vector.multi_reduction <add>, %39, %cst [0] : vector<8x64xf32> to vector<64xf32>
    %41 = vector.shape_cast %40 : vector<64xf32> to vector<1x64xf32>
    %42 = vector.extract_strided_slice %26 {offsets = [1, 0, 0], sizes = [1, 8, 64], strides = [1, 1, 1]} : vector<8x8x64xf32> to vector<1x8x64xf32>
    %43 = vector.shape_cast %42 : vector<1x8x64xf32> to vector<8x64xf32>
    %44 = arith.mulf %43, %36 : vector<8x64xf32>
    %45 = vector.extract_strided_slice %17 {offsets = [0, 1], sizes = [8, 1], strides = [1, 1]} : vector<8x8xf32> to vector<8x1xf32>
    %46 = vector.extract_strided_slice %27 {offsets = [1, 0], sizes = [1, 64], strides = [1, 1]} : vector<8x64xf32> to vector<1x64xf32>
    %47 = vector.broadcast %45 : vector<8x1xf32> to vector<8x64xf32>
    %48 = vector.broadcast %46 : vector<1x64xf32> to vector<8x64xf32>
    %49 = arith.mulf %47, %48 : vector<8x64xf32>
    %50 = arith.addf %44, %49 : vector<8x64xf32>
    %51 = vector.extract_strided_slice %20 {offsets = [0, 1], sizes = [8, 1], strides = [1, 1]} : vector<8x8xf32> to vector<8x1xf32>
    %52 = vector.broadcast %51 : vector<8x1xf32> to vector<8x64xf32>
    %53 = arith.mulf %52, %50 : vector<8x64xf32>
    %cst_22 = arith.constant dense<0.000000e+00> : vector<64xf32>
    %54 = vector.multi_reduction <add>, %53, %cst_22 [0] : vector<8x64xf32> to vector<64xf32>
    %55 = vector.shape_cast %54 : vector<64xf32> to vector<1x64xf32>
    %56 = vector.extract_strided_slice %26 {offsets = [2, 0, 0], sizes = [1, 8, 64], strides = [1, 1, 1]} : vector<8x8x64xf32> to vector<1x8x64xf32>
    %57 = vector.shape_cast %56 : vector<1x8x64xf32> to vector<8x64xf32>
    %58 = arith.mulf %57, %50 : vector<8x64xf32>
    %59 = vector.extract_strided_slice %17 {offsets = [0, 2], sizes = [8, 1], strides = [1, 1]} : vector<8x8xf32> to vector<8x1xf32>
    %60 = vector.extract_strided_slice %27 {offsets = [2, 0], sizes = [1, 64], strides = [1, 1]} : vector<8x64xf32> to vector<1x64xf32>
    %61 = vector.broadcast %59 : vector<8x1xf32> to vector<8x64xf32>
    %62 = vector.broadcast %60 : vector<1x64xf32> to vector<8x64xf32>
    %63 = arith.mulf %61, %62 : vector<8x64xf32>
    %64 = arith.addf %58, %63 : vector<8x64xf32>
    %65 = vector.extract_strided_slice %20 {offsets = [0, 2], sizes = [8, 1], strides = [1, 1]} : vector<8x8xf32> to vector<8x1xf32>
    %66 = vector.broadcast %65 : vector<8x1xf32> to vector<8x64xf32>
    %67 = arith.mulf %66, %64 : vector<8x64xf32>
    %cst_23 = arith.constant dense<0.000000e+00> : vector<64xf32>
    %68 = vector.multi_reduction <add>, %67, %cst_23 [0] : vector<8x64xf32> to vector<64xf32>
    %69 = vector.shape_cast %68 : vector<64xf32> to vector<1x64xf32>
    %70 = vector.extract_strided_slice %26 {offsets = [3, 0, 0], sizes = [1, 8, 64], strides = [1, 1, 1]} : vector<8x8x64xf32> to vector<1x8x64xf32>
    %71 = vector.shape_cast %70 : vector<1x8x64xf32> to vector<8x64xf32>
    %72 = arith.mulf %71, %64 : vector<8x64xf32>
    %73 = vector.extract_strided_slice %17 {offsets = [0, 3], sizes = [8, 1], strides = [1, 1]} : vector<8x8xf32> to vector<8x1xf32>
    %74 = vector.extract_strided_slice %27 {offsets = [3, 0], sizes = [1, 64], strides = [1, 1]} : vector<8x64xf32> to vector<1x64xf32>
    %75 = vector.broadcast %73 : vector<8x1xf32> to vector<8x64xf32>
    %76 = vector.broadcast %74 : vector<1x64xf32> to vector<8x64xf32>
    %77 = arith.mulf %75, %76 : vector<8x64xf32>
    %78 = arith.addf %72, %77 : vector<8x64xf32>
    %79 = vector.extract_strided_slice %20 {offsets = [0, 3], sizes = [8, 1], strides = [1, 1]} : vector<8x8xf32> to vector<8x1xf32>
    %80 = vector.broadcast %79 : vector<8x1xf32> to vector<8x64xf32>
    %81 = arith.mulf %80, %78 : vector<8x64xf32>
    %cst_24 = arith.constant dense<0.000000e+00> : vector<64xf32>
    %82 = vector.multi_reduction <add>, %81, %cst_24 [0] : vector<8x64xf32> to vector<64xf32>
    %83 = vector.shape_cast %82 : vector<64xf32> to vector<1x64xf32>
    %84 = vector.extract_strided_slice %26 {offsets = [4, 0, 0], sizes = [1, 8, 64], strides = [1, 1, 1]} : vector<8x8x64xf32> to vector<1x8x64xf32>
    %85 = vector.shape_cast %84 : vector<1x8x64xf32> to vector<8x64xf32>
    %86 = arith.mulf %85, %78 : vector<8x64xf32>
    %87 = vector.extract_strided_slice %17 {offsets = [0, 4], sizes = [8, 1], strides = [1, 1]} : vector<8x8xf32> to vector<8x1xf32>
    %88 = vector.extract_strided_slice %27 {offsets = [4, 0], sizes = [1, 64], strides = [1, 1]} : vector<8x64xf32> to vector<1x64xf32>
    %89 = vector.broadcast %87 : vector<8x1xf32> to vector<8x64xf32>
    %90 = vector.broadcast %88 : vector<1x64xf32> to vector<8x64xf32>
    %91 = arith.mulf %89, %90 : vector<8x64xf32>
    %92 = arith.addf %86, %91 : vector<8x64xf32>
    %93 = vector.extract_strided_slice %20 {offsets = [0, 4], sizes = [8, 1], strides = [1, 1]} : vector<8x8xf32> to vector<8x1xf32>
    %94 = vector.broadcast %93 : vector<8x1xf32> to vector<8x64xf32>
    %95 = arith.mulf %94, %92 : vector<8x64xf32>
    %cst_25 = arith.constant dense<0.000000e+00> : vector<64xf32>
    %96 = vector.multi_reduction <add>, %95, %cst_25 [0] : vector<8x64xf32> to vector<64xf32>
    %97 = vector.shape_cast %96 : vector<64xf32> to vector<1x64xf32>
    %98 = vector.extract_strided_slice %26 {offsets = [5, 0, 0], sizes = [1, 8, 64], strides = [1, 1, 1]} : vector<8x8x64xf32> to vector<1x8x64xf32>
    %99 = vector.shape_cast %98 : vector<1x8x64xf32> to vector<8x64xf32>
    %100 = arith.mulf %99, %92 : vector<8x64xf32>
    %101 = vector.extract_strided_slice %17 {offsets = [0, 5], sizes = [8, 1], strides = [1, 1]} : vector<8x8xf32> to vector<8x1xf32>
    %102 = vector.extract_strided_slice %27 {offsets = [5, 0], sizes = [1, 64], strides = [1, 1]} : vector<8x64xf32> to vector<1x64xf32>
    %103 = vector.broadcast %101 : vector<8x1xf32> to vector<8x64xf32>
    %104 = vector.broadcast %102 : vector<1x64xf32> to vector<8x64xf32>
    %105 = arith.mulf %103, %104 : vector<8x64xf32>
    %106 = arith.addf %100, %105 : vector<8x64xf32>
    %107 = vector.extract_strided_slice %20 {offsets = [0, 5], sizes = [8, 1], strides = [1, 1]} : vector<8x8xf32> to vector<8x1xf32>
    %108 = vector.broadcast %107 : vector<8x1xf32> to vector<8x64xf32>
    %109 = arith.mulf %108, %106 : vector<8x64xf32>
    %cst_26 = arith.constant dense<0.000000e+00> : vector<64xf32>
    %110 = vector.multi_reduction <add>, %109, %cst_26 [0] : vector<8x64xf32> to vector<64xf32>
    %111 = vector.shape_cast %110 : vector<64xf32> to vector<1x64xf32>
    %112 = vector.extract_strided_slice %26 {offsets = [6, 0, 0], sizes = [1, 8, 64], strides = [1, 1, 1]} : vector<8x8x64xf32> to vector<1x8x64xf32>
    %113 = vector.shape_cast %112 : vector<1x8x64xf32> to vector<8x64xf32>
    %114 = arith.mulf %113, %106 : vector<8x64xf32>
    %115 = vector.extract_strided_slice %17 {offsets = [0, 6], sizes = [8, 1], strides = [1, 1]} : vector<8x8xf32> to vector<8x1xf32>
    %116 = vector.extract_strided_slice %27 {offsets = [6, 0], sizes = [1, 64], strides = [1, 1]} : vector<8x64xf32> to vector<1x64xf32>
    %117 = vector.broadcast %115 : vector<8x1xf32> to vector<8x64xf32>
    %118 = vector.broadcast %116 : vector<1x64xf32> to vector<8x64xf32>
    %119 = arith.mulf %117, %118 : vector<8x64xf32>
    %120 = arith.addf %114, %119 : vector<8x64xf32>
    %121 = vector.extract_strided_slice %20 {offsets = [0, 6], sizes = [8, 1], strides = [1, 1]} : vector<8x8xf32> to vector<8x1xf32>
    %122 = vector.broadcast %121 : vector<8x1xf32> to vector<8x64xf32>
    %123 = arith.mulf %122, %120 : vector<8x64xf32>
    %cst_27 = arith.constant dense<0.000000e+00> : vector<64xf32>
    %124 = vector.multi_reduction <add>, %123, %cst_27 [0] : vector<8x64xf32> to vector<64xf32>
    %125 = vector.shape_cast %124 : vector<64xf32> to vector<1x64xf32>
    %126 = vector.extract_strided_slice %26 {offsets = [7, 0, 0], sizes = [1, 8, 64], strides = [1, 1, 1]} : vector<8x8x64xf32> to vector<1x8x64xf32>
    %127 = vector.shape_cast %126 : vector<1x8x64xf32> to vector<8x64xf32>
    %128 = arith.mulf %127, %120 : vector<8x64xf32>
    %129 = vector.extract_strided_slice %17 {offsets = [0, 7], sizes = [8, 1], strides = [1, 1]} : vector<8x8xf32> to vector<8x1xf32>
    %130 = vector.extract_strided_slice %27 {offsets = [7, 0], sizes = [1, 64], strides = [1, 1]} : vector<8x64xf32> to vector<1x64xf32>
    %131 = vector.broadcast %129 : vector<8x1xf32> to vector<8x64xf32>
    %132 = vector.broadcast %130 : vector<1x64xf32> to vector<8x64xf32>
    %133 = arith.mulf %131, %132 : vector<8x64xf32>
    %134 = arith.addf %128, %133 : vector<8x64xf32>
    %135 = vector.extract_strided_slice %20 {offsets = [0, 7], sizes = [8, 1], strides = [1, 1]} : vector<8x8xf32> to vector<8x1xf32>
    %136 = vector.broadcast %135 : vector<8x1xf32> to vector<8x64xf32>
    %137 = arith.mulf %136, %134 : vector<8x64xf32>
    %cst_28 = arith.constant dense<0.000000e+00> : vector<64xf32>
    %138 = vector.multi_reduction <add>, %137, %cst_28 [0] : vector<8x64xf32> to vector<64xf32>
    %139 = vector.shape_cast %138 : vector<64xf32> to vector<1x64xf32>
    %140 = tpu.concatenate %41, %55, %69, %83, %97, %111, %125, %139 in 0 : vector<1x64xf32>, vector<1x64xf32>, vector<1x64xf32>, vector<1x64xf32>, vector<1x64xf32>, vector<1x64xf32>, vector<1x64xf32>, vector<1x64xf32> -> vector<8x64xf32>
    %141 = vector.broadcast %4 : vector<1x64xf32> to vector<8x64xf32>
    %142 = arith.mulf %8, %141 : vector<8x64xf32>
    %143 = arith.addf %140, %142 : vector<8x64xf32>
    %144 = arith.negf %14 : vector<8x64xf32>
    %145 = math.exp %144 : vector<8x64xf32>
    %cst_29 = arith.constant 1.000000e+00 : f32
    %146 = vector.broadcast %cst_29 : f32 to vector<8x64xf32>
    %147 = arith.addf %146, %145 : vector<8x64xf32>
    %148 = arith.divf %146, %147 : vector<8x64xf32>
    %149 = arith.mulf %14, %148 : vector<8x64xf32>
    %150 = arith.mulf %143, %149 : vector<8x64xf32>
    %c0_30 = arith.constant 0 : index
    %151 = arith.index_cast %c0_i32_6 : i32 to index
    %c0_31 = arith.constant 0 : index
    %c0_32 = arith.constant 0 : index
    %152 = vector.load %arg10[%c0_30, %151, %c0_31, %c0_32] : memref<1x1x8x64xf32, #tpu.memory_space<vmem>>, vector<1x1x8x64xf32>
    %153 = vector.shape_cast %152 : vector<1x1x8x64xf32> to vector<8x64xf32>
    %154 = vector.shape_cast %150 : vector<8x64xf32> to vector<1x1x8x64xf32>
    tpu.vector_store %arg10[%c0_30, %151, %c0_31, %c0_32], %154 {strides = array<i32>} : memref<1x1x8x64xf32, #tpu.memory_space<vmem>>, vector<1x1x8x64xf32>,
    %c1_i32 = arith.constant 1 : i32
    %c0_33 = arith.constant 0 : index
    %c0_34 = arith.constant 0 : index
    %155 = vector.load %arg11[%c0_33, %c0_34] : memref<8x64xf32, #tpu.memory_space<vmem>>, vector<8x64xf32>
    tpu.vector_store %arg11[%c0_33, %c0_34], %134 {strides = array<i32>} : memref<8x64xf32, #tpu.memory_space<vmem>>, vector<8x64xf32>,
    return
  }
  func.func @transform_0(%arg0: i32, %arg1: i32, %arg2: i32) -> (i32, i32, i32, i32) {
    %c0_i32 = arith.constant 0 : i32
    %c0_i32_0 = arith.constant 0 : i32
    return %arg0, %arg2, %c0_i32, %arg1 : i32, i32, i32, i32
  }
  func.func @transform_1(%arg0: i32, %arg1: i32, %arg2: i32) -> (i32, i32, i32, i32) {
    %c0_i32 = arith.constant 0 : i32
    %c0_i32_0 = arith.constant 0 : i32
    return %arg0, %arg2, %c0_i32, %arg1 : i32, i32, i32, i32
  }
  func.func @transform_2(%arg0: i32, %arg1: i32, %arg2: i32) -> (i32, i32, i32, i32) {
    %c0_i32 = arith.constant 0 : i32
    %c0_i32_0 = arith.constant 0 : i32
    return %arg0, %arg2, %c0_i32, %arg1 : i32, i32, i32, i32
  }
  func.func @transform_3(%arg0: i32, %arg1: i32, %arg2: i32) -> (i32, i32, i32, i32) {
    %c0_i32 = arith.constant 0 : i32
    %c0_i32_0 = arith.constant 0 : i32
    %c0_i32_1 = arith.constant 0 : i32
    return %arg0, %arg2, %c0_i32, %c0_i32_0 : i32, i32, i32, i32
  }
  func.func @transform_4(%arg0: i32, %arg1: i32, %arg2: i32) -> (i32, i32, i32, i32) {
    %c0_i32 = arith.constant 0 : i32
    %c0_i32_0 = arith.constant 0 : i32
    %c0_i32_1 = arith.constant 0 : i32
    return %arg0, %arg2, %c0_i32, %c0_i32_0 : i32, i32, i32, i32
  }
  func.func @transform_5(%arg0: i32, %arg1: i32, %arg2: i32) -> (i32, i32) {
    %c0_i32 = arith.constant 0 : i32
    %c0_i32_0 = arith.constant 0 : i32
    return %c0_i32, %arg1 : i32, i32
  }
  func.func @transform_6(%arg0: i32, %arg1: i32, %arg2: i32) -> (i32, i32) {
    %c0_i32 = arith.constant 0 : i32
    %c0_i32_0 = arith.constant 0 : i32
    return %c0_i32, %arg1 : i32, i32
  }
  func.func @transform_7(%arg0: i32, %arg1: i32, %arg2: i32) -> (i32, i32, i32, i32) {
    %c0_i32 = arith.constant 0 : i32
    %c0_i32_0 = arith.constant 0 : i32
    return %arg0, %arg2, %c0_i32, %arg1 : i32, i32, i32, i32
  }
}

module attributes {stable_mosaic.version = 11 : i64} {
  func.func @_linear_acc_kernel(%arg0: i32, %arg1: i32, %arg2: i32, %arg3: memref<16x64xf32, #tpu.memory_space<vmem>>, %arg4: memref<64x32xbf16, #tpu.memory_space<vmem>>, %arg5: memref<1x32xf32, #tpu.memory_space<vmem>>, %arg6: memref<16x32xbf16, #tpu.memory_space<vmem>>, %arg7: memref<16x32xf32, #tpu.memory_space<vmem>>) attributes {dimension_semantics = [#tpu.dimension_semantics<parallel>, #tpu.dimension_semantics<parallel>, #tpu.dimension_semantics<arbitrary>], iteration_bounds = array<i64: 1, 1, 1>, scalar_prefetch = 0 : i64, scratch_operands = 1 : i64, tpu.core_type = #tpu.core_type<tc>, window_params = [{transform_indices = @transform_0, window_bounds = array<i64: 16, 64>}, {transform_indices = @transform_1, window_bounds = array<i64: 64, 32>}, {transform_indices = @transform_2, window_bounds = array<i64: 1, 32>}, {transform_indices = @transform_3, window_bounds = array<i64: 16, 32>}]} {
    %c0_i32 = arith.constant 0 : i32
    %0 = arith.cmpi eq, %arg2, %c0_i32 : i32
    %1 = arith.extui %0 : i1 to i32
    %c0_i32_0 = arith.constant 0 : i32
    %2 = arith.cmpi ne, %1, %c0_i32_0 : i32
    scf.if %2 {
      %cst_10 = arith.constant 0.000000e+00 : f32
      %13 = vector.broadcast %cst_10 : f32 to vector<16x32xf32>
      %c0_11 = arith.constant 0 : index
      %c0_12 = arith.constant 0 : index
      %14 = vector.load %arg7[%c0_11, %c0_12] : memref<16x32xf32, #tpu.memory_space<vmem>>, vector<16x32xf32>
      tpu.vector_store %arg7[%c0_11, %c0_12], %13 {strides = array<i32>} : memref<16x32xf32, #tpu.memory_space<vmem>>, vector<16x32xf32>,
    } else {
    }
    %c0 = arith.constant 0 : index
    %c0_1 = arith.constant 0 : index
    %3 = vector.load %arg7[%c0, %c0_1] : memref<16x32xf32, #tpu.memory_space<vmem>>, vector<16x32xf32>
    %c0_2 = arith.constant 0 : index
    %c0_3 = arith.constant 0 : index
    %4 = vector.load %arg3[%c0_2, %c0_3] : memref<16x64xf32, #tpu.memory_space<vmem>>, vector<16x64xf32>
    %5 = arith.truncf %4 : vector<16x64xf32> to vector<16x64xbf16>
    %c0_4 = arith.constant 0 : index
    %c0_5 = arith.constant 0 : index
    %6 = vector.load %arg4[%c0_4, %c0_5] : memref<64x32xbf16, #tpu.memory_space<vmem>>, vector<64x32xbf16>
    %cst = arith.constant dense<0.000000e+00> : vector<16x32xf32>
    %7 = tpu.matmul %5, %6, %cst {dimension_numbers = #tpu.dot_dimension_numbers<[1], [0], [0], [1], [0, 0, 1, 1], [], []>} : vector<16x64xbf16>, vector<64x32xbf16>, vector<16x32xf32> -> vector<16x32xf32>
    %8 = arith.addf %3, %7 : vector<16x32xf32>
    %c0_6 = arith.constant 0 : index
    %c0_7 = arith.constant 0 : index
    %9 = vector.load %arg7[%c0_6, %c0_7] : memref<16x32xf32, #tpu.memory_space<vmem>>, vector<16x32xf32>
    tpu.vector_store %arg7[%c0_6, %c0_7], %8 {strides = array<i32>} : memref<16x32xf32, #tpu.memory_space<vmem>>, vector<16x32xf32>,
    %c0_i32_8 = arith.constant 0 : i32
    %10 = arith.cmpi eq, %arg2, %c0_i32_8 : i32
    %11 = arith.extui %10 : i1 to i32
    %c0_i32_9 = arith.constant 0 : i32
    %12 = arith.cmpi ne, %11, %c0_i32_9 : i32
    scf.if %12 {
      %c0_10 = arith.constant 0 : index
      %c0_11 = arith.constant 0 : index
      %13 = vector.load %arg7[%c0_10, %c0_11] : memref<16x32xf32, #tpu.memory_space<vmem>>, vector<16x32xf32>
      %c0_12 = arith.constant 0 : index
      %c0_13 = arith.constant 0 : index
      %14 = vector.load %arg5[%c0_12, %c0_13] : memref<1x32xf32, #tpu.memory_space<vmem>>, vector<1x32xf32>
      %15 = vector.broadcast %14 : vector<1x32xf32> to vector<16x32xf32>
      %16 = arith.addf %13, %15 : vector<16x32xf32>
      %17 = arith.truncf %16 : vector<16x32xf32> to vector<16x32xbf16>
      %c0_14 = arith.constant 0 : index
      %c0_15 = arith.constant 0 : index
      %18 = vector.load %arg6[%c0_14, %c0_15] : memref<16x32xbf16, #tpu.memory_space<vmem>>, vector<16x32xbf16>
      tpu.vector_store %arg6[%c0_14, %c0_15], %17 {strides = array<i32>} : memref<16x32xbf16, #tpu.memory_space<vmem>>, vector<16x32xbf16>,
    } else {
    }
    return
  }
  func.func @transform_0(%arg0: i32, %arg1: i32, %arg2: i32) -> (i32, i32) {
    %c0_i32 = arith.constant 0 : i32
    return %arg0, %arg2 : i32, i32
  }
  func.func @transform_1(%arg0: i32, %arg1: i32, %arg2: i32) -> (i32, i32) {
    %c0_i32 = arith.constant 0 : i32
    return %arg2, %arg1 : i32, i32
  }
  func.func @transform_2(%arg0: i32, %arg1: i32, %arg2: i32) -> (i32, i32) {
    %c0_i32 = arith.constant 0 : i32
    %c0_i32_0 = arith.constant 0 : i32
    return %c0_i32, %arg1 : i32, i32
  }
  func.func @transform_3(%arg0: i32, %arg1: i32, %arg2: i32) -> (i32, i32) {
    %c0_i32 = arith.constant 0 : i32
    return %arg0, %arg1 : i32, i32
  }
}

module attributes {stable_mosaic.version = 11 : i64} {
  func.func @_linear_f32_kernel(%arg0: i32, %arg1: i32, %arg2: i32, %arg3: memref<16x32xbf16, #tpu.memory_space<vmem>>, %arg4: memref<32x4xbf16, #tpu.memory_space<vmem>>, %arg5: memref<1x4xf32, #tpu.memory_space<vmem>>, %arg6: memref<16x4xf32, #tpu.memory_space<vmem>>) attributes {dimension_semantics = [#tpu.dimension_semantics<parallel>, #tpu.dimension_semantics<parallel>, #tpu.dimension_semantics<arbitrary>], iteration_bounds = array<i64: 1, 1, 1>, scalar_prefetch = 0 : i64, scratch_operands = 0 : i64, tpu.core_type = #tpu.core_type<tc>, window_params = [{transform_indices = @transform_0, window_bounds = array<i64: 16, 32>}, {transform_indices = @transform_1, window_bounds = array<i64: 32, 4>}, {transform_indices = @transform_2, window_bounds = array<i64: 1, 4>}, {transform_indices = @transform_3, window_bounds = array<i64: 16, 4>}]} {
    %c0_i32 = arith.constant 0 : i32
    %0 = arith.cmpi eq, %arg2, %c0_i32 : i32
    %1 = arith.extui %0 : i1 to i32
    %c0_i32_0 = arith.constant 0 : i32
    %2 = arith.cmpi ne, %1, %c0_i32_0 : i32
    scf.if %2 {
      %cst_10 = arith.constant 0.000000e+00 : f32
      %12 = vector.broadcast %cst_10 : f32 to vector<16x4xf32>
      %c0_11 = arith.constant 0 : index
      %c0_12 = arith.constant 0 : index
      %13 = vector.load %arg6[%c0_11, %c0_12] : memref<16x4xf32, #tpu.memory_space<vmem>>, vector<16x4xf32>
      tpu.vector_store %arg6[%c0_11, %c0_12], %12 {strides = array<i32>} : memref<16x4xf32, #tpu.memory_space<vmem>>, vector<16x4xf32>,
    } else {
    }
    %c0 = arith.constant 0 : index
    %c0_1 = arith.constant 0 : index
    %3 = vector.load %arg6[%c0, %c0_1] : memref<16x4xf32, #tpu.memory_space<vmem>>, vector<16x4xf32>
    %c0_2 = arith.constant 0 : index
    %c0_3 = arith.constant 0 : index
    %4 = vector.load %arg3[%c0_2, %c0_3] : memref<16x32xbf16, #tpu.memory_space<vmem>>, vector<16x32xbf16>
    %c0_4 = arith.constant 0 : index
    %c0_5 = arith.constant 0 : index
    %5 = vector.load %arg4[%c0_4, %c0_5] : memref<32x4xbf16, #tpu.memory_space<vmem>>, vector<32x4xbf16>
    %cst = arith.constant dense<0.000000e+00> : vector<16x4xf32>
    %6 = tpu.matmul %4, %5, %cst {dimension_numbers = #tpu.dot_dimension_numbers<[1], [0], [0], [1], [0, 0, 1, 1], [], []>} : vector<16x32xbf16>, vector<32x4xbf16>, vector<16x4xf32> -> vector<16x4xf32>
    %7 = arith.addf %3, %6 : vector<16x4xf32>
    %c0_6 = arith.constant 0 : index
    %c0_7 = arith.constant 0 : index
    %8 = vector.load %arg6[%c0_6, %c0_7] : memref<16x4xf32, #tpu.memory_space<vmem>>, vector<16x4xf32>
    tpu.vector_store %arg6[%c0_6, %c0_7], %7 {strides = array<i32>} : memref<16x4xf32, #tpu.memory_space<vmem>>, vector<16x4xf32>,
    %c0_i32_8 = arith.constant 0 : i32
    %9 = arith.cmpi eq, %arg2, %c0_i32_8 : i32
    %10 = arith.extui %9 : i1 to i32
    %c0_i32_9 = arith.constant 0 : i32
    %11 = arith.cmpi ne, %10, %c0_i32_9 : i32
    scf.if %11 {
      %c0_10 = arith.constant 0 : index
      %c0_11 = arith.constant 0 : index
      %12 = vector.load %arg6[%c0_10, %c0_11] : memref<16x4xf32, #tpu.memory_space<vmem>>, vector<16x4xf32>
      %c0_12 = arith.constant 0 : index
      %c0_13 = arith.constant 0 : index
      %13 = vector.load %arg5[%c0_12, %c0_13] : memref<1x4xf32, #tpu.memory_space<vmem>>, vector<1x4xf32>
      %14 = vector.broadcast %13 : vector<1x4xf32> to vector<16x4xf32>
      %15 = arith.addf %12, %14 : vector<16x4xf32>
      %c0_14 = arith.constant 0 : index
      %c0_15 = arith.constant 0 : index
      %16 = vector.load %arg6[%c0_14, %c0_15] : memref<16x4xf32, #tpu.memory_space<vmem>>, vector<16x4xf32>
      tpu.vector_store %arg6[%c0_14, %c0_15], %15 {strides = array<i32>} : memref<16x4xf32, #tpu.memory_space<vmem>>, vector<16x4xf32>,
    } else {
    }
    return
  }
  func.func @transform_0(%arg0: i32, %arg1: i32, %arg2: i32) -> (i32, i32) {
    %c0_i32 = arith.constant 0 : i32
    return %arg0, %arg2 : i32, i32
  }
  func.func @transform_1(%arg0: i32, %arg1: i32, %arg2: i32) -> (i32, i32) {
    %c0_i32 = arith.constant 0 : i32
    return %arg2, %arg1 : i32, i32
  }
  func.func @transform_2(%arg0: i32, %arg1: i32, %arg2: i32) -> (i32, i32) {
    %c0_i32 = arith.constant 0 : i32
    %c0_i32_0 = arith.constant 0 : i32
    return %c0_i32, %arg1 : i32, i32
  }
  func.func @transform_3(%arg0: i32, %arg1: i32, %arg2: i32) -> (i32, i32) {
    %c0_i32 = arith.constant 0 : i32
    return %arg0, %arg1 : i32, i32
  }
}

module attributes {stable_mosaic.version = 11 : i64} {
  func.func @_inproj_kernel(%arg0: i32, %arg1: i32, %arg2: memref<16x32xbf16, #tpu.memory_space<vmem>>, %arg3: memref<32x128xbf16, #tpu.memory_space<vmem>>, %arg4: memref<16x64xf32, #tpu.memory_space<vmem>>, %arg5: memref<16x64xf32, #tpu.memory_space<vmem>>, %arg6: memref<16x128xf32, #tpu.memory_space<vmem>>) attributes {dimension_semantics = [#tpu.dimension_semantics<parallel>, #tpu.dimension_semantics<arbitrary>], iteration_bounds = array<i64: 1, 1>, scalar_prefetch = 0 : i64, scratch_operands = 1 : i64, tpu.core_type = #tpu.core_type<tc>, window_params = [{transform_indices = @transform_0, window_bounds = array<i64: 16, 32>}, {transform_indices = @transform_1, window_bounds = array<i64: 32, 128>}, {transform_indices = @transform_2, window_bounds = array<i64: 16, 64>}, {transform_indices = @transform_3, window_bounds = array<i64: 16, 64>}]} {
    %c0_i32 = arith.constant 0 : i32
    %0 = arith.cmpi eq, %arg1, %c0_i32 : i32
    %1 = arith.extui %0 : i1 to i32
    %c0_i32_0 = arith.constant 0 : i32
    %2 = arith.cmpi ne, %1, %c0_i32_0 : i32
    scf.if %2 {
      %cst_10 = arith.constant 0.000000e+00 : f32
      %12 = vector.broadcast %cst_10 : f32 to vector<16x128xf32>
      %c0_11 = arith.constant 0 : index
      %c0_12 = arith.constant 0 : index
      %13 = vector.load %arg6[%c0_11, %c0_12] : memref<16x128xf32, #tpu.memory_space<vmem>>, vector<16x128xf32>
      tpu.vector_store %arg6[%c0_11, %c0_12], %12 {strides = array<i32>} : memref<16x128xf32, #tpu.memory_space<vmem>>, vector<16x128xf32>,
    } else {
    }
    %c0 = arith.constant 0 : index
    %c0_1 = arith.constant 0 : index
    %3 = vector.load %arg6[%c0, %c0_1] : memref<16x128xf32, #tpu.memory_space<vmem>>, vector<16x128xf32>
    %c0_2 = arith.constant 0 : index
    %c0_3 = arith.constant 0 : index
    %4 = vector.load %arg2[%c0_2, %c0_3] : memref<16x32xbf16, #tpu.memory_space<vmem>>, vector<16x32xbf16>
    %c0_4 = arith.constant 0 : index
    %c0_5 = arith.constant 0 : index
    %5 = vector.load %arg3[%c0_4, %c0_5] : memref<32x128xbf16, #tpu.memory_space<vmem>>, vector<32x128xbf16>
    %cst = arith.constant dense<0.000000e+00> : vector<16x128xf32>
    %6 = tpu.matmul %4, %5, %cst {dimension_numbers = #tpu.dot_dimension_numbers<[1], [0], [0], [1], [0, 0, 1, 1], [], []>} : vector<16x32xbf16>, vector<32x128xbf16>, vector<16x128xf32> -> vector<16x128xf32>
    %7 = arith.addf %3, %6 : vector<16x128xf32>
    %c0_6 = arith.constant 0 : index
    %c0_7 = arith.constant 0 : index
    %8 = vector.load %arg6[%c0_6, %c0_7] : memref<16x128xf32, #tpu.memory_space<vmem>>, vector<16x128xf32>
    tpu.vector_store %arg6[%c0_6, %c0_7], %7 {strides = array<i32>} : memref<16x128xf32, #tpu.memory_space<vmem>>, vector<16x128xf32>,
    %c0_i32_8 = arith.constant 0 : i32
    %9 = arith.cmpi eq, %arg1, %c0_i32_8 : i32
    %10 = arith.extui %9 : i1 to i32
    %c0_i32_9 = arith.constant 0 : i32
    %11 = arith.cmpi ne, %10, %c0_i32_9 : i32
    scf.if %11 {
      %c0_10 = arith.constant 0 : index
      %c0_11 = arith.constant 0 : index
      %12 = vector.load %arg6[%c0_10, %c0_11] : memref<16x128xf32, #tpu.memory_space<vmem>>, vector<16x128xf32>
      %13 = vector.extract_strided_slice %12 {offsets = [0, 0], sizes = [16, 64], strides = [1, 1]} : vector<16x128xf32> to vector<16x64xf32>
      %c0_12 = arith.constant 0 : index
      %c0_13 = arith.constant 0 : index
      %14 = vector.load %arg4[%c0_12, %c0_13] : memref<16x64xf32, #tpu.memory_space<vmem>>, vector<16x64xf32>
      tpu.vector_store %arg4[%c0_12, %c0_13], %13 {strides = array<i32>} : memref<16x64xf32, #tpu.memory_space<vmem>>, vector<16x64xf32>,
      %15 = vector.extract_strided_slice %12 {offsets = [0, 64], sizes = [16, 64], strides = [1, 1]} : vector<16x128xf32> to vector<16x64xf32>
      %c0_14 = arith.constant 0 : index
      %c0_15 = arith.constant 0 : index
      %16 = vector.load %arg5[%c0_14, %c0_15] : memref<16x64xf32, #tpu.memory_space<vmem>>, vector<16x64xf32>
      tpu.vector_store %arg5[%c0_14, %c0_15], %15 {strides = array<i32>} : memref<16x64xf32, #tpu.memory_space<vmem>>, vector<16x64xf32>,
    } else {
    }
    return
  }
  func.func @transform_0(%arg0: i32, %arg1: i32) -> (i32, i32) {
    %c0_i32 = arith.constant 0 : i32
    return %arg0, %arg1 : i32, i32
  }
  func.func @transform_1(%arg0: i32, %arg1: i32) -> (i32, i32) {
    %c0_i32 = arith.constant 0 : i32
    %c0_i32_0 = arith.constant 0 : i32
    return %arg1, %c0_i32 : i32, i32
  }
  func.func @transform_2(%arg0: i32, %arg1: i32) -> (i32, i32) {
    %c0_i32 = arith.constant 0 : i32
    %c0_i32_0 = arith.constant 0 : i32
    return %arg0, %c0_i32 : i32, i32
  }
  func.func @transform_3(%arg0: i32, %arg1: i32) -> (i32, i32) {
    %c0_i32 = arith.constant 0 : i32
    %c0_i32_0 = arith.constant 0 : i32
    return %arg0, %c0_i32 : i32, i32
  }
}

module attributes {stable_mosaic.version = 11 : i64} {
  func.func @_moe_experts_kernel(%arg0: i32, %arg1: i32, %arg2: i32, %arg3: memref<16x32xbf16, #tpu.memory_space<vmem>>, %arg4: memref<1x16x1xf32, #tpu.memory_space<vmem>>, %arg5: memref<1x32x128xbf16, #tpu.memory_space<vmem>>, %arg6: memref<1x1x128xf32, #tpu.memory_space<vmem>>, %arg7: memref<1x128x32xbf16, #tpu.memory_space<vmem>>, %arg8: memref<1x1x32xf32, #tpu.memory_space<vmem>>, %arg9: memref<16x32xbf16, #tpu.memory_space<vmem>>, %arg10: memref<16x32xf32, #tpu.memory_space<vmem>>) attributes {dimension_semantics = [#tpu.dimension_semantics<parallel>, #tpu.dimension_semantics<arbitrary>, #tpu.dimension_semantics<arbitrary>], iteration_bounds = array<i64: 1, 4, 1>, scalar_prefetch = 0 : i64, scratch_operands = 1 : i64, tpu.core_type = #tpu.core_type<tc>, window_params = [{transform_indices = @transform_0, window_bounds = array<i64: 16, 32>}, {transform_indices = @transform_1, window_bounds = array<i64: 1, 16, 1>}, {transform_indices = @transform_2, window_bounds = array<i64: 1, 32, 128>}, {transform_indices = @transform_3, window_bounds = array<i64: 1, 1, 128>}, {transform_indices = @transform_4, window_bounds = array<i64: 1, 128, 32>}, {transform_indices = @transform_5, window_bounds = array<i64: 1, 1, 32>}, {transform_indices = @transform_6, window_bounds = array<i64: 16, 32>}]} {
    %c0_i32 = arith.constant 0 : i32
    %0 = arith.cmpi eq, %arg1, %c0_i32 : i32
    %c0_i32_0 = arith.constant 0 : i32
    %1 = arith.cmpi eq, %arg2, %c0_i32_0 : i32
    %2 = arith.andi %0, %1 : i1
    %3 = arith.extui %2 : i1 to i32
    %c0_i32_1 = arith.constant 0 : i32
    %4 = arith.cmpi ne, %3, %c0_i32_1 : i32
    scf.if %4 {
      %cst_39 = arith.constant 0.000000e+00 : f32
      %72 = vector.broadcast %cst_39 : f32 to vector<16x32xf32>
      %c0_40 = arith.constant 0 : index
      %c0_41 = arith.constant 0 : index
      %73 = vector.load %arg10[%c0_40, %c0_41] : memref<16x32xf32, #tpu.memory_space<vmem>>, vector<16x32xf32>
      tpu.vector_store %arg10[%c0_40, %c0_41], %72 {strides = array<i32>} : memref<16x32xf32, #tpu.memory_space<vmem>>, vector<16x32xf32>,
    } else {
    }
    %c0 = arith.constant 0 : index
    %c0_2 = arith.constant 0 : index
    %c0_3 = arith.constant 0 : index
    %5 = vector.load %arg4[%c0, %c0_2, %c0_3] : memref<1x16x1xf32, #tpu.memory_space<vmem>>, vector<1x16x1xf32>
    %6 = vector.shape_cast %5 : vector<1x16x1xf32> to vector<16x1xf32>
    %c0_4 = arith.constant 0 : index
    %c0_5 = arith.constant 0 : index
    %7 = vector.load %arg3[%c0_4, %c0_5] : memref<16x32xbf16, #tpu.memory_space<vmem>>, vector<16x32xbf16>
    %c0_6 = arith.constant 0 : index
    %c0_7 = arith.constant 0 : index
    %c0_8 = arith.constant 0 : index
    %8 = vector.load %arg5[%c0_6, %c0_7, %c0_8] : memref<1x32x128xbf16, #tpu.memory_space<vmem>>, vector<1x32x128xbf16>
    %9 = vector.shape_cast %8 : vector<1x32x128xbf16> to vector<32x128xbf16>
    %cst = arith.constant dense<0.000000e+00> : vector<16x128xf32>
    %10 = tpu.matmul %7, %9, %cst {dimension_numbers = #tpu.dot_dimension_numbers<[1], [0], [0], [1], [0, 0, 1, 1], [], []>} : vector<16x32xbf16>, vector<32x128xbf16>, vector<16x128xf32> -> vector<16x128xf32>
    %c0_9 = arith.constant 0 : index
    %c0_10 = arith.constant 0 : index
    %c0_11 = arith.constant 0 : index
    %11 = vector.load %arg6[%c0_9, %c0_10, %c0_11] : memref<1x1x128xf32, #tpu.memory_space<vmem>>, vector<1x1x128xf32>
    %12 = vector.shape_cast %11 : vector<1x1x128xf32> to vector<1x128xf32>
    %13 = vector.broadcast %12 : vector<1x128xf32> to vector<16x128xf32>
    %14 = arith.addf %10, %13 : vector<16x128xf32>
    %cst_12 = arith.constant 5.000000e-01 : f32
    %15 = vector.broadcast %cst_12 : f32 to vector<16x128xf32>
    %16 = arith.mulf %15, %14 : vector<16x128xf32>
    %cst_13 = arith.constant 0.707106769 : f32
    %17 = vector.broadcast %cst_13 : f32 to vector<16x128xf32>
    %18 = arith.mulf %14, %17 : vector<16x128xf32>
    %19 = math.absf %18 : vector<16x128xf32>
    %cst_14 = arith.constant 0.327591091 : f32
    %20 = vector.broadcast %cst_14 : f32 to vector<16x128xf32>
    %21 = arith.mulf %20, %19 : vector<16x128xf32>
    %cst_15 = arith.constant 1.000000e+00 : f32
    %22 = vector.broadcast %cst_15 : f32 to vector<16x128xf32>
    %23 = arith.addf %22, %21 : vector<16x128xf32>
    %cst_16 = arith.constant 1.000000e+00 : f32
    %24 = vector.broadcast %cst_16 : f32 to vector<16x128xf32>
    %25 = arith.divf %24, %23 : vector<16x128xf32>
    %cst_17 = arith.constant 1.06140542 : f32
    %26 = vector.broadcast %cst_17 : f32 to vector<16x128xf32>
    %27 = arith.mulf %26, %25 : vector<16x128xf32>
    %cst_18 = arith.constant -1.45315206 : f32
    %28 = vector.broadcast %cst_18 : f32 to vector<16x128xf32>
    %29 = arith.addf %27, %28 : vector<16x128xf32>
    %30 = arith.mulf %29, %25 : vector<16x128xf32>
    %cst_19 = arith.constant 1.42141378 : f32
    %31 = vector.broadcast %cst_19 : f32 to vector<16x128xf32>
    %32 = arith.addf %30, %31 : vector<16x128xf32>
    %33 = arith.mulf %32, %25 : vector<16x128xf32>
    %cst_20 = arith.constant -0.284496725 : f32
    %34 = vector.broadcast %cst_20 : f32 to vector<16x128xf32>
    %35 = arith.addf %33, %34 : vector<16x128xf32>
    %36 = arith.mulf %35, %25 : vector<16x128xf32>
    %cst_21 = arith.constant 0.254829586 : f32
    %37 = vector.broadcast %cst_21 : f32 to vector<16x128xf32>
    %38 = arith.addf %36, %37 : vector<16x128xf32>
    %39 = arith.mulf %38, %25 : vector<16x128xf32>
    %cst_22 = arith.constant 0.000000e+00 : f32
    %40 = vector.broadcast %cst_22 : f32 to vector<16x128xf32>
    %41 = arith.subf %40, %19 : vector<16x128xf32>
    %42 = arith.mulf %41, %19 : vector<16x128xf32>
    %43 = math.exp %42 : vector<16x128xf32>
    %44 = arith.mulf %39, %43 : vector<16x128xf32>
    %cst_23 = arith.constant 1.000000e+00 : f32
    %45 = vector.broadcast %cst_23 : f32 to vector<16x128xf32>
    %46 = arith.subf %45, %44 : vector<16x128xf32>
    %cst_24 = arith.constant 0.000000e+00 : f32
    %47 = vector.broadcast %cst_24 : f32 to vector<16x128xf32>
    %48 = arith.cmpf oge, %18, %47 : vector<16x128xf32>
    %cst_25 = arith.constant 0.000000e+00 : f32
    %49 = vector.broadcast %cst_25 : f32 to vector<16x128xf32>
    %50 = arith.subf %49, %46 : vector<16x128xf32>
    %51 = arith.select %48, %46, %50 : vector<16x128xi1>, vector<16x128xf32>
    %cst_26 = arith.constant 1.000000e+00 : f32
    %52 = vector.broadcast %cst_26 : f32 to vector<16x128xf32>
    %53 = arith.addf %52, %51 : vector<16x128xf32>
    %54 = arith.mulf %16, %53 : vector<16x128xf32>
    %55 = arith.truncf %54 : vector<16x128xf32> to vector<16x128xbf16>
    %c0_27 = arith.constant 0 : index
    %c0_28 = arith.constant 0 : index
    %c0_29 = arith.constant 0 : index
    %56 = vector.load %arg7[%c0_27, %c0_28, %c0_29] : memref<1x128x32xbf16, #tpu.memory_space<vmem>>, vector<1x128x32xbf16>
    %57 = vector.shape_cast %56 : vector<1x128x32xbf16> to vector<128x32xbf16>
    %cst_30 = arith.constant dense<0.000000e+00> : vector<16x32xf32>
    %58 = tpu.matmul %55, %57, %cst_30 {dimension_numbers = #tpu.dot_dimension_numbers<[1], [0], [0], [1], [0, 0, 1, 1], [], []>} : vector<16x128xbf16>, vector<128x32xbf16>, vector<16x32xf32> -> vector<16x32xf32>
    %c0_i32_31 = arith.constant 0 : i32
    %59 = arith.cmpi eq, %arg2, %c0_i32_31 : i32
    %60 = arith.extui %59 : i1 to i32
    %c0_i32_32 = arith.constant 0 : i32
    %61 = arith.cmpi ne, %60, %c0_i32_32 : i32
    scf.if %61 {
      %c0_39 = arith.constant 0 : index
      %c0_40 = arith.constant 0 : index
      %72 = vector.load %arg10[%c0_39, %c0_40] : memref<16x32xf32, #tpu.memory_space<vmem>>, vector<16x32xf32>
      %c0_41 = arith.constant 0 : index
      %c0_42 = arith.constant 0 : index
      %c0_43 = arith.constant 0 : index
      %73 = vector.load %arg8[%c0_41, %c0_42, %c0_43] : memref<1x1x32xf32, #tpu.memory_space<vmem>>, vector<1x1x32xf32>
      %74 = vector.shape_cast %73 : vector<1x1x32xf32> to vector<1x32xf32>
      %75 = vector.broadcast %6 : vector<16x1xf32> to vector<16x32xf32>
      %76 = vector.broadcast %74 : vector<1x32xf32> to vector<16x32xf32>
      %77 = arith.mulf %75, %76 : vector<16x32xf32>
      %78 = arith.addf %72, %77 : vector<16x32xf32>
      %c0_44 = arith.constant 0 : index
      %c0_45 = arith.constant 0 : index
      %79 = vector.load %arg10[%c0_44, %c0_45] : memref<16x32xf32, #tpu.memory_space<vmem>>, vector<16x32xf32>
      tpu.vector_store %arg10[%c0_44, %c0_45], %78 {strides = array<i32>} : memref<16x32xf32, #tpu.memory_space<vmem>>, vector<16x32xf32>,
    } else {
    }
    %c0_33 = arith.constant 0 : index
    %c0_34 = arith.constant 0 : index
    %62 = vector.load %arg10[%c0_33, %c0_34] : memref<16x32xf32, #tpu.memory_space<vmem>>, vector<16x32xf32>
    %63 = vector.broadcast %6 : vector<16x1xf32> to vector<16x32xf32>
    %64 = arith.mulf %63, %58 : vector<16x32xf32>
    %65 = arith.addf %62, %64 : vector<16x32xf32>
    %c0_35 = arith.constant 0 : index
    %c0_36 = arith.constant 0 : index
    %66 = vector.load %arg10[%c0_35, %c0_36] : memref<16x32xf32, #tpu.memory_space<vmem>>, vector<16x32xf32>
    tpu.vector_store %arg10[%c0_35, %c0_36], %65 {strides = array<i32>} : memref<16x32xf32, #tpu.memory_space<vmem>>, vector<16x32xf32>,
    %c3_i32 = arith.constant 3 : i32
    %67 = arith.cmpi eq, %arg1, %c3_i32 : i32
    %c0_i32_37 = arith.constant 0 : i32
    %68 = arith.cmpi eq, %arg2, %c0_i32_37 : i32
    %69 = arith.andi %67, %68 : i1
    %70 = arith.extui %69 : i1 to i32
    %c0_i32_38 = arith.constant 0 : i32
    %71 = arith.cmpi ne, %70, %c0_i32_38 : i32
    scf.if %71 {
      %c0_39 = arith.constant 0 : index
      %c0_40 = arith.constant 0 : index
      %72 = vector.load %arg10[%c0_39, %c0_40] : memref<16x32xf32, #tpu.memory_space<vmem>>, vector<16x32xf32>
      %73 = arith.truncf %72 : vector<16x32xf32> to vector<16x32xbf16>
      %c0_41 = arith.constant 0 : index
      %c0_42 = arith.constant 0 : index
      %74 = vector.load %arg9[%c0_41, %c0_42] : memref<16x32xbf16, #tpu.memory_space<vmem>>, vector<16x32xbf16>
      tpu.vector_store %arg9[%c0_41, %c0_42], %73 {strides = array<i32>} : memref<16x32xbf16, #tpu.memory_space<vmem>>, vector<16x32xbf16>,
    } else {
    }
    return
  }
  func.func @transform_0(%arg0: i32, %arg1: i32, %arg2: i32) -> (i32, i32) {
    %c0_i32 = arith.constant 0 : i32
    %c0_i32_0 = arith.constant 0 : i32
    return %arg0, %c0_i32 : i32, i32
  }
  func.func @transform_1(%arg0: i32, %arg1: i32, %arg2: i32) -> (i32, i32, i32) {
    %c0_i32 = arith.constant 0 : i32
    %c0_i32_0 = arith.constant 0 : i32
    return %arg1, %arg0, %c0_i32 : i32, i32, i32
  }
  func.func @transform_2(%arg0: i32, %arg1: i32, %arg2: i32) -> (i32, i32, i32) {
    %c0_i32 = arith.constant 0 : i32
    %c0_i32_0 = arith.constant 0 : i32
    return %arg1, %c0_i32, %arg2 : i32, i32, i32
  }
  func.func @transform_3(%arg0: i32, %arg1: i32, %arg2: i32) -> (i32, i32, i32) {
    %c0_i32 = arith.constant 0 : i32
    %c0_i32_0 = arith.constant 0 : i32
    return %arg1, %c0_i32, %arg2 : i32, i32, i32
  }
  func.func @transform_4(%arg0: i32, %arg1: i32, %arg2: i32) -> (i32, i32, i32) {
    %c0_i32 = arith.constant 0 : i32
    %c0_i32_0 = arith.constant 0 : i32
    return %arg1, %arg2, %c0_i32 : i32, i32, i32
  }
  func.func @transform_5(%arg0: i32, %arg1: i32, %arg2: i32) -> (i32, i32, i32) {
    %c0_i32 = arith.constant 0 : i32
    %c0_i32_0 = arith.constant 0 : i32
    %c0_i32_1 = arith.constant 0 : i32
    return %arg1, %c0_i32, %c0_i32_0 : i32, i32, i32
  }
  func.func @transform_6(%arg0: i32, %arg1: i32, %arg2: i32) -> (i32, i32) {
    %c0_i32 = arith.constant 0 : i32
    %c0_i32_0 = arith.constant 0 : i32
    return %arg0, %c0_i32 : i32, i32
  }
}

module attributes {stable_mosaic.version = 11 : i64} {
  func.func @_rmsnorm_head_kernel(%arg0: i32, %arg1: i32, %arg2: memref<16x32xbf16, #tpu.memory_space<vmem>>, %arg3: memref<1x32xf32, #tpu.memory_space<vmem>>, %arg4: memref<32x64xbf16, #tpu.memory_space<vmem>>, %arg5: memref<1x64xf32, #tpu.memory_space<vmem>>, %arg6: memref<16x64xf32, #tpu.memory_space<vmem>>) attributes {dimension_semantics = [#tpu.dimension_semantics<parallel>, #tpu.dimension_semantics<parallel>], iteration_bounds = array<i64: 1, 1>, scalar_prefetch = 0 : i64, scratch_operands = 0 : i64, tpu.core_type = #tpu.core_type<tc>, window_params = [{transform_indices = @transform_0, window_bounds = array<i64: 16, 32>}, {pipeline_mode = #tpu.pipeline_mode<synchronous>, transform_indices = @transform_1, window_bounds = array<i64: 1, 32>}, {transform_indices = @transform_2, window_bounds = array<i64: 32, 64>}, {transform_indices = @transform_3, window_bounds = array<i64: 1, 64>}, {transform_indices = @transform_4, window_bounds = array<i64: 16, 64>}]} {
    %c0 = arith.constant 0 : index
    %c0_0 = arith.constant 0 : index
    %0 = vector.load %arg2[%c0, %c0_0] : memref<16x32xbf16, #tpu.memory_space<vmem>>, vector<16x32xbf16>
    %1 = arith.extf %0 : vector<16x32xbf16> to vector<16x32xf32>
    %2 = arith.mulf %1, %1 : vector<16x32xf32>
    %cst = arith.constant dense<0.000000e+00> : vector<16xf32>
    %3 = vector.multi_reduction <add>, %2, %cst [1] : vector<16x32xf32> to vector<16xf32>
    %4 = vector.shape_cast %3 : vector<16xf32> to vector<16x1xf32>
    %cst_1 = arith.constant 1.000000e-24 : f32
    %5 = vector.broadcast %cst_1 : f32 to vector<16x1xf32>
    %6 = arith.maximumf %4, %5 : vector<16x1xf32>
    %7 = math.rsqrt %6 : vector<16x1xf32>
    %8 = vector.broadcast %7 : vector<16x1xf32> to vector<16x32xf32>
    %9 = arith.mulf %1, %8 : vector<16x32xf32>
    %c0_2 = arith.constant 0 : index
    %c0_3 = arith.constant 0 : index
    %10 = vector.load %arg3[%c0_2, %c0_3] : memref<1x32xf32, #tpu.memory_space<vmem>>, vector<1x32xf32>
    %cst_4 = arith.constant 5.65685415 : f32
    %11 = vector.broadcast %cst_4 : f32 to vector<1x32xf32>
    %12 = arith.mulf %11, %10 : vector<1x32xf32>
    %13 = vector.broadcast %12 : vector<1x32xf32> to vector<16x32xf32>
    %14 = arith.mulf %9, %13 : vector<16x32xf32>
    %15 = arith.truncf %14 : vector<16x32xf32> to vector<16x32xbf16>
    %c0_5 = arith.constant 0 : index
    %c0_6 = arith.constant 0 : index
    %16 = vector.load %arg4[%c0_5, %c0_6] : memref<32x64xbf16, #tpu.memory_space<vmem>>, vector<32x64xbf16>
    %cst_7 = arith.constant dense<0.000000e+00> : vector<16x64xf32>
    %17 = tpu.matmul %15, %16, %cst_7 {dimension_numbers = #tpu.dot_dimension_numbers<[1], [0], [0], [1], [0, 0, 1, 1], [], []>} : vector<16x32xbf16>, vector<32x64xbf16>, vector<16x64xf32> -> vector<16x64xf32>
    %c0_8 = arith.constant 0 : index
    %c0_9 = arith.constant 0 : index
    %18 = vector.load %arg5[%c0_8, %c0_9] : memref<1x64xf32, #tpu.memory_space<vmem>>, vector<1x64xf32>
    %19 = vector.broadcast %18 : vector<1x64xf32> to vector<16x64xf32>
    %20 = arith.addf %17, %19 : vector<16x64xf32>
    %c0_10 = arith.constant 0 : index
    %c0_11 = arith.constant 0 : index
    %21 = vector.load %arg6[%c0_10, %c0_11] : memref<16x64xf32, #tpu.memory_space<vmem>>, vector<16x64xf32>
    tpu.vector_store %arg6[%c0_10, %c0_11], %20 {strides = array<i32>} : memref<16x64xf32, #tpu.memory_space<vmem>>, vector<16x64xf32>,
    return
  }
  func.func @transform_0(%arg0: i32, %arg1: i32) -> (i32, i32) {
    %c0_i32 = arith.constant 0 : i32
    %c0_i32_0 = arith.constant 0 : i32
    return %arg0, %c0_i32 : i32, i32
  }
  func.func @transform_1(%arg0: i32, %arg1: i32) -> (i32, i32) {
    %c0_i32 = arith.constant 0 : i32
    %c0_i32_0 = arith.constant 0 : i32
    %c0_i32_1 = arith.constant 0 : i32
    return %c0_i32, %c0_i32_0 : i32, i32
  }
  func.func @transform_2(%arg0: i32, %arg1: i32) -> (i32, i32) {
    %c0_i32 = arith.constant 0 : i32
    %c0_i32_0 = arith.constant 0 : i32
    return %c0_i32, %arg1 : i32, i32
  }
  func.func @transform_3(%arg0: i32, %arg1: i32) -> (i32, i32) {
    %c0_i32 = arith.constant 0 : i32
    %c0_i32_0 = arith.constant 0 : i32
    return %c0_i32, %arg1 : i32, i32
  }
  func.func @transform_4(%arg0: i32, %arg1: i32) -> (i32, i32) {
    %c0_i32 = arith.constant 0 : i32
    return %arg0, %arg1 : i32, i32
  }
}

</mosaic_0001>

<bundles_post_ra>
// kernel: viper_forward.30
= control target key start
LH: loop header
LB: loop body
LE: loop exit
PB: predicated region body
PF: predicated region fallthrough
CT: control target
= control target key end

     0   :  { %s547_s12 = smov 0   ;;  %s549_s13 = smov 0   ;;  %s602_s0 = inlined_call_operand.vmem [shape: f32[2,8,64], index: 0, kind: input, shape index: {}]   ;;  %s603_s1 = inlined_call_operand.vmem [shape: f32[4,64], index: 1, kind: input, shape index: {}]   ;;  %s604_s2 = inlined_call_operand.vmem [shape: f32[1,64], index: 2, kind: input, shape index: {}]   ;;  %s605_s3 = inlined_call_operand.vmem [shape: f32[2,8,64], index: 3, kind: output, shape index: {}]  }
   0x1   :  { %s551_s14 = smov 0  }
   0x2 LB: > { %s32_s15 = sadd.s32 1, %s520_s13  ;;  %p462_p0 = scmp.ge.s32.totalorder %s524_s14, 1  ;;  %s524_s14 = sphi %s551_s14, %s13_s14   ;;  %s520_s13 = sphi %s549_s13, %s607_s13   ;;  %s516_s12 = sphi %s547_s12, %s606_s12  }
   0x3   : > { %p34_p1 = scmp.ge.s32.totalorder %s32_s15, 2  ;;  %p186_p2 = scmp.lt.s32.totalorder %s524_s14, 3 }
   0x5   : > { %s609_s15 = smov (%p34_p1, %s32_s15), 0  ;;  %p187_p3 = pnand %p462_p0, %p186_p2 }
   0x6   : > { %vm258_vm0 = vcmask (!%p187_p3), 518144   ;;  %p227_p4 = scmp.lt.s32.totalorder (!%p187_p3), %s516_s12, 1  ;;  %v526_v0 = vmov (!%p187_p3), 0.0   ;;  %vm265_vm1 = vcmask (!%p187_p3), 1042432   ;;  %v467_v1 = vld [vmem:[%s603_s1 + $0x1] ss:$0 sm:$0xff] (!%p187_p3) }
   0x7   : > { %190 = sbr.rel (%p187_p3) target bundleno = 61 (0x3d), region = 32  ;;  %259 = vst.msk [vmem:[#allocation2] sm:$0x7] (!%p187_p3), %vm258_vm0, %v526_v0  ;;  %v468_v3 = vld [vmem:[%s603_s1 + $0x2] ss:$0 sm:$0xff] (!%p187_p3)  ;;  %vm336_vm2 = vcmask (!%p187_p3), 523269  }
   0x8   : > { %v469_v4 = vld [vmem:[%s603_s1 + $0x3] ss:$0 sm:$0xff] (!%p187_p3)  ;;  %v466_v6 = vld [vmem:[%s603_s1] ss:$0 sm:$0xff] (!%p187_p3)  ;;  %vm291_vm3 = vcmask (!%p187_p3), 1046528   ;;  %vm306_vm4 = vcmask (!%p187_p3), 1045504  }
   0x9   : > { %v465_v9 = vld [vmem:[%s604_s2] ss:$0 sm:$0xff] (!%p187_p3)  ;;  %vm321_vm5 = vcmask (!%p187_p3), 1044480   ;;  %vm334_vm6 = vcmask (!%p187_p3), 523264  }
   0xe   : > { %s611_s12 = smov (!%p227_p4, %s516_s12), 1  ;;  %v261_v7 = vld [vmem:[#allocation2] sm:$0x7] }
   0xf   : > { %s463_s16 = sshll.u32 %s611_s12, 3 }
  0x10   : > { %s236_s19 = scalar_lea.vmem %s602_s0, %s463_s16  ;;  %s253_s5 = scalar_lea.vmem %s605_s3, %s463_s16 }
  0x11   : > { %v260_v2 = vld [vmem:[%s236_s19] sm:$0xff] }
  0x12   : > { %v263_v5 = vrot.slane %v260_v2, 5  ;;  %337 = vst.msk [vmem:[#allocation2 - $0x5] sm:$0xe0] %vm336_vm2, %v260_v2 }
  0x14   : > { %v266_v8 = vsel %vm265_vm1, %v261_v7, %v263_v5  ;;  %v288_v10 = vmul.f32 %v467_v1, %v263_v5  ;;  %v303_v11 = vmul.f32 %v468_v3, %v263_v5  ;;  %v318_v12 = vmul.f32 %v469_v4, %v263_v5 }
  0x15   : > { %v280_v13 = vmul.f32 %v466_v6, %v266_v8  ;;  %v287_v14 = vmul.f32 %v467_v1, %v266_v8  ;;  %v302_v15 = vmul.f32 %v468_v3, %v266_v8  ;;  %v317_v16 = vmul.f32 %v469_v4, %v266_v8 }
  0x16   : > { %v293_v17 = vrot.slane %v288_v10, 1  ;;  %v308_v21 = vrot.slane %v303_v11, 2  ;;  %v323_v24 = vrot.slane %v318_v12, 3 }
  0x17   : > { %v281_v18 = vadd.f32 %v465_v9, %v280_v13  ;;  %v292_v19 = vrot.slane %v287_v14, 1  ;;  %v307_v20 = vrot.slane %v302_v15, 2  ;;  %v322_v23 = vrot.slane %v317_v16, 3 }
  0x19   : > { %v294_v22 = vsel %vm291_vm3, %v292_v19, %v293_v17  ;;  %v309_v26 = vsel %vm306_vm4, %v307_v20, %v308_v21  ;;  %v324_v28 = vsel %vm321_vm5, %v322_v23, %v323_v24 }
  0x1a   : > { %v296_v25 = vadd.f32 %v294_v22, %v281_v18 }
  0x1c   : > { %v311_v27 = vadd.f32 %v309_v26, %v296_v25 }
  0x1e   : > { %v326_v29 = vadd.f32 %v324_v28, %v311_v27 }
  0x20   : > { %v470_v30 = vmul.f32 -1.442695, %v326_v29 }
  0x22   : > { %498 = vpow2.f32 %v470_v30 }
  0x2c   : > { %v499_v31 = vpop.eup %498 }
  0x2d   : > { %v330_v32 = vadd.f32 1.0, %v499_v31 }
  0x2f   : > { %500 = vrcp.f32 %v330_v32 }
  0x39   : > { %v501_v33 = vpop.eup %500 }
  0x3a   : > { %v333_v34 = vmul.f32 %v501_v33, %v326_v29 }
  0x3c   : > { %335 = vst.msk [vmem:[%s253_s5] sm:$0xff] %vm334_vm6, %v333_v34 }
  0x3d PF: > { %s13_s14 = sadd.s32 1, %s524_s14   ;;  %s606_s12 = smov %s520_s13 }
  0x3e   : > { %p10_p5 = scmp.ge.s32.totalorder %s13_s14, 4   ;;  %s607_s13 = smov %s609_s15 }
  0x40   :  { %12 = sbr.rel (!%p10_p5) target bundleno = 2 (0x2), region = 72 }

// kernel: viper_forward.29
= control target key start
LH: loop header
LB: loop body
LE: loop exit
PB: predicated region body
PF: predicated region fallthrough
CT: control target
= control target key end

     0   :  { %v135_v0 = vmov 0.0   ;;  %vm136_vm0 = vmmov 0   ;;  %vm41_vm1 = vcmask 261120   ;;  %vm95_vm2 = vcmask 523264   ;;  %s182_s1 = inlined_call_operand.vmem [shape: bf16[32,128], index: 1, kind: input, shape index: {}]   ;;  %s183_s0 = inlined_call_operand.vmem [shape: f32[16,32], index: 0, kind: input, shape index: {}]   ;;  %s184_s2 = inlined_call_operand.vmem [shape: f32[16,64], index: 2, kind: output, shape index: {0}]   ;;  %s185_s3 = inlined_call_operand.vmem [shape: f32[16,64], index: 3, kind: output, shape index: {1}]  }
   0x1   :  { %122 = vmatprep.subr.bf16.mxu0 %v135_v0  ;;  %v133_v1 = vld [vmem:[%s182_s1] sm:$0xff]   ;;  %126 = vmatprep.mubr.msk.bf16.mxu0 %vm136_vm0, %v135_v0  ;;  %v134_v2 = vld [vmem:[%s182_s1 + $0x8] sm:$0xff]   ;;  %s137_s1 = smov 64  }
   0x2   :  { %123 = vmatpush3.bf16.msra.mxu0 %v133_v1  ;;  %v22_v3 = vld [vmem:[%s183_s0] sm:$0xff]  ;;  %v23_v4 = vld [vmem:[%s183_s0 + $0x8] sm:$0xff] }
   0x3   :  { %124 = vmatprep.subr.bf16.mxu0 %v135_v0  ;;  %v24_v5 = vpack.c.bf16 %v23_v4, %v22_v3 }
   0x6   :  { %125 = vmatpush3.bf16.msra.mxu0 %v134_v2 }
   0x9   :  { %127 = vmatmul.mubr.msk.bf16.vlgmr.msra.gmra.mrb[0].mxu0 %vm41_vm1, %v24_v5 }
  0xdc   :  { %v79_v6 = vpop.f32.mrb[0].mxu0 }
  0xdd   :  { %96 = vst.msk [vmem:[%s184_s2] sm:$0xff] %vm95_vm2, %v79_v6  ;;  %100 = vrot.lane.b32.xlu0 %v79_v6, %s137_s1  ;;  %v128_v7 = vpop.f32.mrb[1].mxu0 }
  0xde   :  { %v82_v8 = vpop.f32.mrb[2].mxu0 }
  0xdf   :  { %97 = vst.msk [vmem:[%s184_s2 + $0x8] sm:$0xff] %vm95_vm2, %v82_v8  ;;  %v129_v9 = vpop.f32.mrb[3].mxu0 }
  0xe1   :  { %102 = vrot.lane.b32.xlu0 %v82_v8, %s137_s1 }
 0x14f   :  { %v101_v10 = vpop.permute.xlu0 %100 }
 0x150   :  { %106 = vst.msk [vmem:[%s185_s3] sm:$0xff] %vm95_vm2, %v101_v10 }
 0x153   :  { %v103_v11 = vpop.permute.xlu0 %102 }
 0x154   :  { %107 = vst.msk [vmem:[%s185_s3 + $0x8] sm:$0xff] %vm95_vm2, %v103_v11 }

// kernel: viper_forward.31
= control target key start
LH: loop header
LB: loop body
LE: loop exit
PB: predicated region body
PF: predicated region fallthrough
CT: control target
= control target key end

     0   :  { %v258_v0 = vmov 0.0   ;;  %vm259_vm0 = vmmov 0   ;;  %vm56_vm1 = vcmask 523264   ;;  %vm133_vm2 = vcmask 1040384   ;;  %s261_s11 = smov 126   ;;  %s342_s1 = inlined_call_operand.vmem [shape: bf16[64,18], index: 1, kind: input, shape index: {}]   ;;  %s343_s0 = inlined_call_operand.vmem [shape: f32[16,64], index: 0, kind: input, shape index: {}]   ;;  %s344_s2 = inlined_call_operand.vmem [shape: bf16[2,64], index: 2, kind: input, shape index: {}]   ;;  %s345_s6 = inlined_call_operand.vmem [shape: f32[16,8], index: 6, kind: output, shape index: {2}]   ;;  %s346_s5 = inlined_call_operand.vmem [shape: f32[16,8], index: 5, kind: output, shape index: {1}]   ;;  %s347_s3 = inlined_call_operand.vmem [shape: f32[1,64], index: 3, kind: input, shape index: {}]   ;;  %s348_s4 = inlined_call_operand.vmem [shape: f32[16,64], index: 4, kind: output, shape index: {0}]  }
   0x1   :  { %224 = vmatprep.subr.bf16.mxu0 %v258_v0  ;;  %v246_v1 = vld [vmem:[%s342_s1] sm:$0xff]   ;;  %232 = vmatprep.mubr.msk.bf16.mxu0 %vm259_vm0, %v258_v0  ;;  %v247_v2 = vld [vmem:[%s342_s1 + $0x8] sm:$0xff]   ;;  %v248_v3 = vld [vmem:[%s342_s1 + $0x10] sm:$0xff]   ;;  %vm129_vm3 = vcmask 15360   ;;  %vm109_vm4 = vcmask 64512  }
   0x2   :  { %236 = vmatprep.subr.bf16.mxu1 %v258_v0  ;;  %238 = vmatprep.mubr.msk.bf16.mxu1 %vm259_vm0, %v258_v0  ;;  %v249_v4 = vld [vmem:[%s342_s1 + $0x18] sm:$0xff]   ;;  %v21_v5 = vld [vmem:[%s343_s0] sm:$0xff]  ;;  %v22_v6 = vld [vmem:[%s343_s0 + $0x8] sm:$0xff]  ;;  %s260_s1 = smov 118  }
   0x3   :  { %225 = vmatpush3.bf16.msra.mxu0 %v246_v1  ;;  %v23_v7 = vpack.c.bf16 %v22_v6, %v21_v5  ;;  %v121_v8 = vld [vmem:[%s344_s2] sm:$0x1] }
   0x4   :  { %226 = vmatprep.subr.bf16.mxu0 %v258_v0  ;;  %v135_v9 = vsel %vm133_vm2, %v121_v8, 0  ;;  %v215_v19 = vld [vmem:[%s347_s3] ss:$0 sm:$0xff] }
   0x5   :  { %237 = vmatpush3.bf16.msra.mxu1 %v135_v9 }
   0x7   :  { %227 = vmatpush3.bf16.msra.mxu0 %v247_v2 }
   0x8   :  { %228 = vmatprep.subr.bf16.mxu0 %v258_v0 }
   0xb   :  { %229 = vmatpush3.bf16.msra.mxu0 %v248_v3 }
   0xc   :  { %230 = vmatprep.subr.bf16.mxu0 %v258_v0 }
   0xf   :  { %231 = vmatpush3.bf16.msra.mxu0 %v249_v4 }
  0x12   :  { %233 = vmatmul.mubr.msk.bf16.vlgmr.msra.gmra.mrb[0].mxu0 %vm56_vm1, %v23_v7 }
  0xe5   :  { %v94_v10 = vpop.f32.mrb[0].mxu0 }
  0xe6   :  { %112 = vrot.lane.b32.xlu1 %v94_v10, %s260_s1  ;;  %103 = vrot.lane.b32.xlu0 %v94_v10, %s261_s11  ;;  %v234_v11 = vpop.f32.mrb[1].mxu0 }
  0xe7   :  { %v97_v12 = vpop.f32.mrb[2].mxu0 }
  0xe8   :  { %v120_v13 = vpack.c.bf16 %v97_v12, %v94_v10  ;;  %v235_v14 = vpop.f32.mrb[3].mxu0 }
  0xea   :  { %114 = vrot.lane.b32.xlu1 %v97_v12, %s260_s1  ;;  %105 = vrot.lane.b32.xlu0 %v97_v12, %s261_s11 }
  0xeb   :  { %239 = vmatmul.mubr.msk.bf16.vlgmr.msra.gmra.mrb[0].mxu1 %vm129_vm3, %v120_v13 }
 0x158   :  { %v113_v15 = vpop.permute.xlu1 %112  ;;  %v104_v16 = vpop.permute.xlu0 %103 }
 0x159   :  { %118 = vst.msk [vmem:[%s345_s6] sm:$0xff] %vm109_vm4, %v113_v15  ;;  %110 = vst.msk [vmem:[%s346_s5] sm:$0xff] %vm109_vm4, %v104_v16 }
 0x15c   :  { %v115_v17 = vpop.permute.xlu1 %114  ;;  %v106_v18 = vpop.permute.xlu0 %105 }
 0x15d   :  { %119 = vst.msk [vmem:[%s345_s6 + $0x8] sm:$0xff] %vm109_vm4, %v115_v17  ;;  %111 = vst.msk [vmem:[%s346_s5 + $0x8] sm:$0xff] %vm109_vm4, %v106_v18 }
 0x1be   :  { %v171_v20 = vpop.f32.mrb[0].mxu1 }
 0x1bf   :  { %v172_v21 = vadd.f32 %v215_v19, %v171_v20  ;;  %v240_v22 = vpop.f32.mrb[1].mxu1 }
 0x1c0   :  { %v174_v23 = vpop.f32.mrb[2].mxu1 }
 0x1c1   :  { %v180_v24 = vand.u32 2147483647, %v172_v21  ;;  %v175_v25 = vadd.f32 %v215_v19, %v174_v23  ;;  %v241_v26 = vpop.f32.mrb[3].mxu1  ;;  %v178_v37 = vmax.f32 %v172_v21, 0.0 }
 0x1c3   :  { %v182_v27 = vsub.f32 0.0, %v180_v24  ;;  %v181_v28 = vand.u32 2147483647, %v175_v25  ;;  %v179_v41 = vmax.f32 %v175_v25, 0.0 }
 0x1c5   :  { %v184_v29 = vmul.f32 1.442695, %v182_v27  ;;  %v183_v30 = vsub.f32 0.0, %v181_v28 }
 0x1c7   :  { %250 = vpow2.f32 %v184_v29  ;;  %v186_v31 = vmul.f32 1.442695, %v183_v30 }
 0x1c9   :  { %252 = vpow2.f32 %v186_v31 }
 0x1d1   :  { %v251_v32 = vpop.eup %250 }
 0x1d2   :  { %v188_v33 = vadd.f32 1.0, %v251_v32 }
 0x1d3   :  { %v253_v34 = vpop.eup %252 }
 0x1d4   :  { %254 = vlog2.f32 %v188_v33  ;;  %v189_v35 = vadd.f32 1.0, %v253_v34 }
 0x1d6   :  { %256 = vlog2.f32 %v189_v35 }
 0x1de   :  { %v255_v36 = vpop.eup %254 }
 0x1df   :  { %v191_v38 = vmul.f32 0.6931472, %v255_v36 }
 0x1e0   :  { %v257_v39 = vpop.eup %256 }
 0x1e1   :  { %v194_v40 = vadd.f32 %v191_v38, %v178_v37  ;;  %v193_v42 = vmul.f32 0.6931472, %v257_v39 }
 0x1e3   :  { %196 = vst.msk [vmem:[%s348_s4] sm:$0xff] %vm56_vm1, %v194_v40  ;;  %v195_v43 = vadd.f32 %v193_v42, %v179_v41 }
 0x1e5   :  { %197 = vst.msk [vmem:[%s348_s4 + $0x8] sm:$0xff] %vm56_vm1, %v195_v43 }

// kernel: viper_forward.32
= control target key start
LH: loop header
LB: loop body
LE: loop exit
PB: predicated region body
PF: predicated region fallthrough
CT: control target
= control target key end

     0   :  { %s1190_s24 = smov 0   ;;  %s1192_s25 = smov 0   ;;  %s1289_s0 = inlined_call_operand.vmem [shape: f32[2,1,8,64], index: 0, kind: input, shape index: {}]   ;;  %s1290_s1 = inlined_call_operand.vmem [shape: f32[2,1,8,64], index: 1, kind: input, shape index: {}]   ;;  %s1291_s2 = inlined_call_operand.vmem [shape: f32[2,1,8,64], index: 2, kind: input, shape index: {}]   ;;  %s1292_s3 = inlined_call_operand.vmem [shape: f32[2,1,8,8], index: 3, kind: input, shape index: {}]   ;;  %s1293_s4 = inlined_call_operand.vmem [shape: f32[2,1,8,8], index: 4, kind: input, shape index: {}]   ;;  %s1294_s5 = inlined_call_operand.vmem [shape: f32[8,64], index: 5, kind: input, shape index: {}]   ;;  %s1295_s6 = inlined_call_operand.vmem [shape: f32[1,64], index: 6, kind: input, shape index: {}]   ;;  %s1296_s7 = inlined_call_operand.vmem [shape: f32[2,1,8,64], index: 7, kind: output, shape index: {}]  }
   0x1   :  { %s1194_s26 = smov 0  }
   0x2 LB: > { %s36_s27 = sadd.s32 1, %s1134_s25  ;;  %p1034_p0 = scmp.ge.s32.totalorder %s1138_s26, 1  ;;  %s1138_s26 = sphi %s1194_s26, %s17_s26   ;;  %s1134_s25 = sphi %s1192_s25, %s1298_s25   ;;  %s1130_s24 = sphi %s1190_s24, %s1297_s24  }
   0x3   : > { %p38_p1 = scmp.ge.s32.totalorder %s36_s27, 2  ;;  %p352_p2 = scmp.lt.s32.totalorder %s1138_s26, 3 }
   0x5   : > { %s1300_s27 = smov (%p38_p1, %s36_s27), 0  ;;  %p353_p3 = pnand %p1034_p0, %p352_p2 }
   0x6   : > { %p435_p4 = scmp.lt.s32.totalorder (!%p353_p3), %s1130_s24, 1  ;;  %v1140_v0 = vmov (!%p353_p3), 2   ;;  %v1141_v1 = vmov (!%p353_p3), 0   ;;  %vm500_vm0 = vcmask (!%p353_p3), 523264   ;;  %v1142_v2 = vmov (!%p353_p3), 0.0   ;;  %v502_v23 = vld [vmem:[%s1294_s5] sm:$0xff] (!%p353_p3) }
   0x7   : > { %356 = sbr.rel (%p353_p3) target bundleno = 212 (0xd4), region = 48  ;;  %1081 = vset.pattern.permute.xlu1 (!%p353_p3), %v1140_v0  ;;  %1079 = vset.pattern.permute.xlu0 (!%p353_p3), %v1141_v1  ;;  %501 = vst.msk [vmem:[#allocation2] sm:$0xff] (!%p353_p3), %vm500_vm0, %v1142_v2  ;;  %v1143_v4 = vmov (!%p353_p3), 3   ;;  %v1144_v5 = vmov (!%p353_p3), 1   ;;  %v1145_v6 = vmov (!%p353_p3), 4   ;;  %v1146_v7 = vmov (!%p353_p3), 5  }
   0x8   : > { %v1147_v9 = vmov (!%p353_p3), 6   ;;  %v1148_v10 = vmov (!%p353_p3), 7   ;;  %v515_v11 = vlaneseq (!%p353_p3)  ;;  %v1149_v12 = vmov (!%p353_p3), 1966171168  }
   0x9   : > { %v513_v13 = vunpack.c.l.s4 (!%p353_p3), %v1149_v12  ;;  %vm812_vm1 = vcmask (!%p353_p3), 1040384   ;;  %vm814_vm2 = vcmask (!%p353_p3), 1041408   ;;  %vm816_vm3 = vcmask (!%p353_p3), 1042432  }
   0xa   : > { %v1219_v14 = vshrl.u32 (!%p353_p3), %v515_v11, 7  ;;  %vm818_vm4 = vcmask (!%p353_p3), 1043456   ;;  %vm820_vm5 = vcmask (!%p353_p3), 1044480   ;;  %vm822_vm6 = vcmask (!%p353_p3), 1045504  }
   0xb   : > { %v514_v15 = vunpack.c.0.s8 (!%p353_p3), %v513_v13  ;;  %vm824_vm7 = vcmask (!%p353_p3), 1046528  }
   0xc   : > { %v562_v19 = vsub.s32 (!%p353_p3), 0, %v1219_v14  ;;  %v658_v52 = vsub.s32 (!%p353_p3), 1, %v1219_v14  ;;  %v681_v62 = vsub.s32 (!%p353_p3), 2, %v1219_v14 }
   0xd   : > { %v517_v16 = vsub.s32 (!%p353_p3), %v514_v15, %v1219_v14 }
   0xe   : > { %s1302_s24 = smov (!%p435_p4, %s1130_s24), 1  ;;  %v504_v46 = vld [vmem:[#allocation2] sm:$0xff] }
   0xf   : > { %s1209_s28 = sshll.u32 %s1302_s24, 3 }
  0x10   : > { %s471_s8 = scalar_lea.vmem %s1292_s3, %s1209_s28  ;;  %s478_s11 = scalar_lea.vmem %s1293_s4, %s1209_s28 }
  0x11   : > { %v508_v3 = vld [vmem:[%s471_s8] sm:$0xff]  ;;  %s454_s14 = scalar_lea.vmem %s1290_s1, %s1209_s28  ;;  %s444_s19 = scalar_lea.vmem %s1289_s0, %s1209_s28 }
  0x12   : > { %676 = vperm.xlu1 %1081, %v508_v3   ;;  %628 = vperm.xlu0 %1079, %v508_v3   ;;  %v509_v8 = vld [vmem:[%s478_s11] sm:$0xff]  ;;  %s464_s22 = scalar_lea.vmem %s1291_s2, %s1209_s28  ;;  %s495_s8 = scalar_lea.vmem %s1296_s7, %s1209_s28 }
  0x13   : > { %v506_v17 = vld [vmem:[%s454_s14] sm:$0xff] }
  0x14   : > { %v518_v18 = vrot.slane %v506_v17, %v517_v16  ;;  %v511_v27 = vcombine.high %v506_v17, %v506_v17  ;;  %v1234_v39 = vld [vmem:[%s444_s19] sm:$0xff] }
  0x15   : > { %v1237_v42 = vmul.f32 %v506_v17, %v1234_v39 }
  0x16   : > { %1082 = vset.pattern.permute.xlu1 %v1143_v4  ;;  %1080 = vset.pattern.permute.xlu0 %v1144_v5  ;;  %v534_v20 = vrot.slane %v518_v18, %v517_v16  ;;  %v526_v21 = vcombine.high %v518_v18, %v518_v18  ;;  %v525_v31 = vrot.slane %v511_v27, %v517_v16  ;;  %v727_v18 = vsub.s32 4, %v1219_v14 }
  0x17   : > { %699 = vperm.xlu1 %1082, %v508_v3   ;;  %653 = vperm.xlu0 %1080, %v508_v3   ;;  %v634_v49 = vrot.slane %v1237_v42, %v562_v19  ;;  %v659_v63 = vrot.slane %v1237_v42, %v658_v52 }
  0x18   : > { %v563_v22 = vrot.slane %v534_v20, %v562_v19  ;;  %v548_v24 = vrot.slane %v526_v21, %v517_v16  ;;  %v556_v28 = vcombine.high %v534_v20, %v534_v20  ;;  %v541_v35 = vrot.slane %v525_v31, %v517_v16 }
  0x19   : > { %v527_v36 = vcombine.high %v525_v31, %v525_v31 }
  0x1a   : > { %v600_v25 = vmul.f32 %v563_v22, %v502_v23  ;;  %v567_v26 = vrot.slane %v548_v24, %v562_v19  ;;  %v558_v32 = vcombine.high %v548_v24, %v548_v24  ;;  %v571_v33 = vrot.slane %v556_v28, %v562_v19 }
  0x1b   : > { %1083 = vset.pattern.permute.xlu1 %v1145_v6  ;;  %1084 = vset.pattern.permute.xlu0 %v1146_v7  ;;  %v579_v40 = vrot.slane %v541_v35, %v562_v19  ;;  %v555_v41 = vrot.slane %v527_v36, %v517_v16  ;;  %v557_v51 = vcombine.high %v541_v35, %v541_v35 }
  0x1c   : > { %722 = vperm.xlu1 %1083, %v508_v3   ;;  %745 = vperm.xlu0 %1084, %v508_v3   ;;  %v608_v29 = vmul.f32 1.442695, %v600_v25  ;;  %v601_v30 = vmul.f32 %v567_v26, %v502_v23  ;;  %v602_v37 = vmul.f32 %v571_v33, %v502_v23  ;;  %v575_v38 = vrot.slane %v558_v32, %v562_v19 }
  0x1d   : > { %v604_v47 = vmul.f32 %v579_v40, %v502_v23  ;;  %v583_v48 = vrot.slane %v555_v41, %v562_v19  ;;  %v587_v59 = vrot.slane %v557_v51, %v562_v19  ;;  %v559_v60 = vcombine.high %v555_v41, %v555_v41 }
  0x1e   : > { %1096 = vpow2.f32 %v608_v29  ;;  %v610_v34 = vmul.f32 1.442695, %v601_v30  ;;  %v612_v43 = vmul.f32 1.442695, %v602_v37  ;;  %v603_v44 = vmul.f32 %v575_v38, %v502_v23 }
  0x1f   : > { %v616_v56 = vmul.f32 1.442695, %v604_v47  ;;  %v605_v57 = vmul.f32 %v583_v48, %v502_v23  ;;  %v728_v28 = vrot.slane %v1237_v42, %v727_v18  ;;  %v796_v41 = vsub.s32 7, %v1219_v14  ;;  %v1257_v47 = vld [vmem:[%s464_s22] sm:$0xff] }
  0x20   : > { %1085 = vset.pattern.permute.xlu1 %v1147_v9  ;;  %1087 = vset.pattern.permute.xlu0 %v1144_v5  ;;  %1098 = vpow2.f32 %v610_v34  ;;  %v614_v50 = vmul.f32 1.442695, %v603_v44  ;;  %v606_v5 = vmul.f32 %v587_v59, %v502_v23  ;;  %v773_v34 = vsub.s32 6, %v1219_v14 }
  0x21   : > { %768 = vperm.xlu1 %1085, %v508_v3   ;;  %663 = vperm.xlu0 %1087, %v509_v8   ;;  %1100 = vpow2.f32 %v612_v43  ;;  %v797_v51 = vrot.slane %v1237_v42, %v796_v41 }
  0x22   : > { %1102 = vpow2.f32 %v614_v50  ;;  %v620_v12 = vmul.f32 1.442695, %v606_v5  ;;  %v774_v44 = vrot.slane %v1237_v42, %v773_v34 }
  0x23   : > { %1104 = vpow2.f32 %v616_v56 }
  0x25   : > { %1086 = vset.pattern.permute.xlu1 %v1141_v1  ;;  %1090 = vset.pattern.permute.xlu0 %v1148_v10  ;;  %v618_v1 = vmul.f32 1.442695, %v605_v57 }
  0x26   : > { %639 = vperm.xlu1 %1086, %v509_v8   ;;  %791 = vperm.xlu0 %1090, %v508_v3  }
  0x27   : > { %1106 = vpow2.f32 %v618_v1 }
  0x28   : > { %v1097_v45 = vpop.eup %1096  ;;  %1108 = vpow2.f32 %v620_v12 }
  0x29   : > { %v625_v53 = vmul.f32 %v1097_v45, %v504_v46 }
  0x2a   : > { %1088 = vset.pattern.permute.xlu1 %v1140_v0  ;;  %1093 = vset.pattern.permute.xlu0 %v1147_v9  ;;  %v1099_v61 = vpop.eup %1098 }
  0x2b   : > { %686 = vperm.xlu1 %1088, %v509_v8   ;;  %778 = vperm.xlu0 %1093, %v509_v8  }
  0x2f   : > { %1089 = vset.pattern.permute.xlu1 %v1143_v4  ;;  %1095 = vset.pattern.permute.xlu0 %v1148_v10 }
  0x30   : > { %709 = vperm.xlu1 %1089, %v509_v8  }
  0x34   : > { %1091 = vset.pattern.permute.xlu1 %v1145_v6  ;;  %v591_v6 = vrot.slane %v559_v60, %v562_v19  ;;  %v750_v19 = vsub.s32 5, %v1219_v14 }
  0x35   : > { %732 = vperm.xlu1 %1091, %v509_v8  }
  0x36   : > { %v607_v13 = vmul.f32 %v591_v6, %v502_v23  ;;  %v751_v31 = vrot.slane %v1237_v42, %v750_v19 }
  0x38   : > { %v622_v25 = vmul.f32 1.442695, %v607_v13 }
  0x39   : > { %1092 = vset.pattern.permute.xlu1 %v1146_v7  ;;  %v682_v7 = vrot.slane %v1237_v42, %v681_v62 }
  0x3a   : > { %755 = vperm.xlu1 %1092, %v509_v8   ;;  %1110 = vpow2.f32 %v622_v25 }
  0x3e   : > { %1094 = vset.pattern.permute.xlu1 %v1148_v10  ;;  %v1101_v10 = vpop.eup %1100 }
  0x3f   : > { %801 = vperm.xlu1 %1094, %v509_v8   ;;  %v704_v8 = vsub.s32 3, %v1219_v14  ;;  %v1103_v21 = vpop.eup %1102 }
  0x40   : > { %v1105_v23 = vpop.eup %1104 }
  0x41   : > { %v705_v16 = vrot.slane %v1237_v42, %v704_v8  ;;  %v1107_v36 = vpop.eup %1106 }
  0x42   : > { %v1109_v48 = vpop.eup %1108 }
  0x44   : > { %v1111_v57 = vpop.eup %1110 }
  0x91   : > { %v677_v54 = vpop.permute.xlu1 %676  ;;  %v629_v55 = vpop.permute.xlu0 %628 }
  0x92   : > { %v635_v58 = vmul.f32 %v634_v49, %v629_v55  ;;  %v683_v15 = vmul.f32 %v682_v7, %v677_v54 }
  0x94   : > { %v636_v0 = vadd.f32 %v635_v58, %v625_v53  ;;  %v1042_v53 = vmul.f32 -1.442695, %v1257_v47 }
  0x96   : > { %v700_v2 = vpop.permute.xlu1 %699  ;;  %v654_v3 = vpop.permute.xlu0 %653  ;;  %v651_v4 = vmul.f32 %v1099_v61, %v636_v0  ;;  %1112 = vpow2.f32 %v1042_v53 }
  0x97   : > { %v660_v9 = vmul.f32 %v659_v63, %v654_v3  ;;  %v706_v26 = vmul.f32 %v705_v16, %v700_v2 }
  0x99   : > { %v661_v11 = vadd.f32 %v660_v9, %v651_v4 }
  0x9b   : > { %v674_v17 = vmul.f32 %v1101_v10, %v661_v11  ;;  %v723_v20 = vpop.permute.xlu1 %722  ;;  %v746_v24 = vpop.permute.xlu0 %745 }
  0x9c   : > { %v729_v33 = vmul.f32 %v728_v28, %v723_v20  ;;  %v752_v38 = vmul.f32 %v751_v31, %v746_v24 }
  0x9d   : > { %v684_v22 = vadd.f32 %v683_v15, %v674_v17 }
  0x9f   : > { %v697_v27 = vmul.f32 %v1103_v21, %v684_v22 }
  0xa0   : > { %v769_v29 = vpop.permute.xlu1 %768  ;;  %v664_v35 = vpop.permute.xlu0 %663 }
  0xa1   : > { %v707_v30 = vadd.f32 %v706_v26, %v697_v27  ;;  %v666_v50 = vmul.f32 %v664_v35, %v661_v11  ;;  %v775_v54 = vmul.f32 %v774_v44, %v769_v29  ;;  %v1113_v21 = vpop.eup %1112 }
  0xa3   : > { %v720_v32 = vmul.f32 %v1105_v23, %v707_v30  ;;  %v667_v58 = vsel %vm500_vm0, %v666_v50, 0.0 }
  0xa4   : > { %v668_v2 = vrot.slane %v667_v58, 4 }
  0xa5   : > { %v730_v37 = vadd.f32 %v729_v33, %v720_v32  ;;  %v640_v40 = vpop.permute.xlu1 %639  ;;  %v792_v46 = vpop.permute.xlu0 %791 }
  0xa6   : > { %v642_v45 = vmul.f32 %v640_v40, %v636_v0  ;;  %v798_v60 = vmul.f32 %v797_v51, %v792_v46  ;;  %v669_v10 = vadd.f32 %v668_v2, %v667_v58 }
  0xa7   : > { %v743_v43 = vmul.f32 %v1107_v36, %v730_v37 }
  0xa8   : > { %v644_v55 = vsel %vm500_vm0, %v642_v45, 0.0 }
  0xa9   : > { %v753_v49 = vadd.f32 %v752_v38, %v743_v43  ;;  %v645_v63 = vrot.slane %v644_v55, 4 }
  0xaa   : > { %v687_v52 = vpop.permute.xlu1 %686  ;;  %v779_v61 = vpop.permute.xlu0 %778 }
  0xab   : > { %v689_v56 = vmul.f32 %v687_v52, %v684_v22  ;;  %v766_v14 = vmul.f32 %v1109_v48, %v753_v49  ;;  %v646_v6 = vadd.f32 %v645_v63, %v644_v55  ;;  %v670_v22 = vrot.slane %v669_v10, 2 }
  0xad   : > { %v690_v59 = vsel %vm500_vm0, %v689_v56, 0.0  ;;  %v776_v62 = vadd.f32 %v775_v54, %v766_v14  ;;  %v647_v16 = vrot.slane %v646_v6, 2  ;;  %v671_v31 = vadd.f32 %v670_v22, %v669_v10 }
  0xae   : > { %v691_v0 = vrot.slane %v690_v59, 4 }
  0xaf   : > { %v710_v42 = vpop.permute.xlu1 %709  ;;  %v789_v1 = vmul.f32 %v1111_v57, %v776_v62  ;;  %v781_v3 = vmul.f32 %v779_v61, %v776_v62  ;;  %v648_v26 = vadd.f32 %v647_v16, %v646_v6  ;;  %v672_v45 = vrot.slane %v671_v31, 1 }
  0xb0   : > { %v712_v4 = vmul.f32 %v710_v42, %v707_v30  ;;  %v692_v8 = vadd.f32 %v691_v0, %v690_v59  ;;  %v837_v30 = vadd.f32 1.0, %v1113_v21 }
  0xb1   : > { %v799_v5 = vadd.f32 %v798_v60, %v789_v1  ;;  %v782_v11 = vsel %vm500_vm0, %v781_v3, 0.0  ;;  %v649_v36 = vrot.slane %v648_v26, 1  ;;  %v673_v56 = vadd.f32 %v672_v45, %v671_v31  ;;  %v1041_v1 = vld [vmem:[%s1295_s6] ss:$0 sm:$0xff] }
  0xb2   : > { %v713_v7 = vsel %vm500_vm0, %v712_v4, 0.0  ;;  %v693_v17 = vrot.slane %v692_v8, 2  ;;  %v783_v18 = vrot.slane %v782_v11, 4  ;;  %1114 = vrcp.f32 %v837_v30 }
  0xb3   : > { %v714_v9 = vrot.slane %v713_v7, 4  ;;  %843 = vst.msk [vmem:[#allocation2] sm:$0xff] %vm500_vm0, %v799_v5  ;;  %v650_v51 = vadd.f32 %v649_v36, %v648_v26 }
  0xb4   : > { %v733_v12 = vpop.permute.xlu1 %732  ;;  %v694_v23 = vadd.f32 %v693_v17, %v692_v8  ;;  %v784_v29 = vadd.f32 %v783_v18, %v782_v11  ;;  %v832_v8 = vmul.f32 %v1041_v1, %v1234_v39 }
  0xb5   : > { %v715_v13 = vadd.f32 %v714_v9, %v713_v7  ;;  %v735_v15 = vmul.f32 %v733_v12, %v730_v37  ;;  %v813_v60 = vsel %vm812_vm1, %v650_v51, %v673_v56 }
  0xb6   : > { %v695_v40 = vrot.slane %v694_v23, 1  ;;  %v785_v41 = vrot.slane %v784_v29, 2 }
  0xb7   : > { %v736_v20 = vsel %vm500_vm0, %v735_v15, 0.0  ;;  %v716_v19 = vrot.slane %v715_v13, 2 }
  0xb8   : > { %v737_v24 = vrot.slane %v736_v20, 4  ;;  %v696_v53 = vadd.f32 %v695_v40, %v694_v23  ;;  %v786_v54 = vadd.f32 %v785_v41, %v784_v29 }
  0xb9   : > { %v756_v25 = vpop.permute.xlu1 %755  ;;  %v717_v32 = vadd.f32 %v716_v19, %v715_v13 }
  0xba   : > { %v738_v27 = vadd.f32 %v737_v24, %v736_v20  ;;  %v758_v28 = vmul.f32 %v756_v25, %v753_v49  ;;  %v815_v62 = vsel %vm814_vm2, %v813_v60, %v696_v53  ;;  %v787_v63 = vrot.slane %v786_v54, 1 }
  0xbb   : > { %v718_v46 = vrot.slane %v717_v32, 1 }
  0xbc   : > { %v739_v33 = vrot.slane %v738_v27, 2  ;;  %v759_v34 = vsel %vm500_vm0, %v758_v28, 0.0  ;;  %v1115_v4 = vpop.eup %1114  ;;  %v788_v7 = vadd.f32 %v787_v63, %v786_v54 }
  0xbd   : > { %v760_v35 = vrot.slane %v759_v34, 4  ;;  %v719_v14 = vadd.f32 %v718_v46, %v717_v32  ;;  %v840_v11 = vmul.f32 %v1115_v4, %v1257_v47 }
  0xbe   : > { %v740_v37 = vadd.f32 %v739_v33, %v738_v27  ;;  %v802_v38 = vpop.permute.xlu1 %801 }
  0xbf   : > { %v761_v43 = vadd.f32 %v760_v35, %v759_v34  ;;  %v804_v44 = vmul.f32 %v802_v38, %v799_v5  ;;  %v817_v42 = vsel %vm816_vm3, %v815_v62, %v719_v14 }
  0xc0   : > { %v741_v48 = vrot.slane %v740_v37, 1 }
  0xc1   : > { %v762_v49 = vrot.slane %v761_v43, 2  ;;  %v805_v50 = vsel %vm500_vm0, %v804_v44, 0.0 }
  0xc2   : > { %v806_v52 = vrot.slane %v805_v50, 4  ;;  %v742_v58 = vadd.f32 %v741_v48, %v740_v37 }
  0xc3   : > { %v763_v55 = vadd.f32 %v762_v49, %v761_v43 }
  0xc4   : > { %v807_v57 = vadd.f32 %v806_v52, %v805_v50  ;;  %v819_v3 = vsel %vm818_vm4, %v817_v42, %v742_v58 }
  0xc5   : > { %v764_v59 = vrot.slane %v763_v55, 1 }
  0xc6   : > { %v808_v61 = vrot.slane %v807_v57, 2 }
  0xc7   : > { %v765_v0 = vadd.f32 %v764_v59, %v763_v55 }
  0xc8   : > { %v809_v2 = vadd.f32 %v808_v61, %v807_v57 }
  0xc9   : > { %v821_v5 = vsel %vm820_vm5, %v819_v3, %v765_v0 }
  0xca   : > { %v810_v6 = vrot.slane %v809_v2, 1  ;;  %v823_v10 = vsel %vm822_vm6, %v821_v5, %v788_v7 }
  0xcc   : > { %v811_v9 = vadd.f32 %v810_v6, %v809_v2 }
  0xce   : > { %v825_v12 = vsel %vm824_vm7, %v823_v10, %v811_v9 }
  0xcf   : > { %v833_v13 = vadd.f32 %v832_v8, %v825_v12 }
  0xd1   : > { %v841_v15 = vmul.f32 %v840_v11, %v833_v13 }
  0xd3   : > { %842 = vst.msk [vmem:[%s495_s8] sm:$0xff] %vm500_vm0, %v841_v15 }
  0xd4 PF: > { %s17_s26 = sadd.s32 1, %s1138_s26   ;;  %s1297_s24 = smov %s1134_s25 }
  0xd5   : > { %p14_p5 = scmp.ge.s32.totalorder %s17_s26, 4   ;;  %s1298_s25 = smov %s1300_s27 }
  0xd7   :  { %16 = sbr.rel (!%p14_p5) target bundleno = 2 (0x2), region = 100 }

// kernel: div.33
= control target key start
LH: loop header
LB: loop body
LE: loop exit
PB: predicated region body
PF: predicated region fallthrough
CT: control target
= control target key end

     0   :  { %vm7_vm0 = vcmask 64512   ;;  %s39_s0 = inlined_call_operand.vmem [shape: f32[16], index: 0, kind: input, shape index: {}]   ;;  %s40_s1 = inlined_call_operand.vmem [shape: f32[2,8], index: 1, kind: output, shape index: {}]  }
   0x1   :  { %v4_v0 = vld [vmem:[%s39_s0] sm:$0x1]  ;;  %s22_s0 = smov 120  }
   0x2   :  { %5 = vst [vmem:[#allocation1] sm:$0x1] %v4_v0 }
   0x9   :  { %v9_v1 = vld [vmem:[#allocation1] sm:$0x1]  }
   0xa   :  { %v6_v2 = vld [vmem:[#allocation1] sm:$0x1]   ;;  %10 = vrot.lane.b32.xlu0 %v9_v1, %s22_s0 }
   0xb   :  { %8 = vst.msk [vmem:[#allocation0] sm:$0x1] %vm7_vm0, %v6_v2  }
  0x7c   :  { %v11_v3 = vpop.permute.xlu0 %10  }
  0x7d   :  { %14 = vst.msk [vmem:[#allocation0 + $0x1] sm:$0x1] %vm7_vm0, %v11_v3  }
  0x84   :  { %v18_v4 = vld [vmem:[#allocation0] sm:$0x3] }
  0x85   :  { %20 = vst [vmem:[%s40_s1] sm:$0x3] %v18_v4 }

// kernel: viper_forward.33
= control target key start
LH: loop header
LB: loop body
LE: loop exit
PB: predicated region body
PF: predicated region fallthrough
CT: control target
= control target key end

     0   :  { %vm19_vm0 = vcmask 261120   ;;  %v171_v0 = vmov 0.0   ;;  %vm172_vm1 = vmmov 0   ;;  %vm59_vm2 = vcmask 523264   ;;  %s224_s1 = inlined_call_operand.vmem [shape: bf16[64,32], index: 1, kind: input, shape index: {}]   ;;  %s225_s0 = inlined_call_operand.vmem [shape: f32[16,64], index: 0, kind: input, shape index: {}]   ;;  %s226_s2 = inlined_call_operand.vmem [shape: f32[1,32], index: 2, kind: input, shape index: {}]   ;;  %s227_s3 = inlined_call_operand.vmem [shape: bf16[16,32], index: 3, kind: output, shape index: {}]  }
   0x1   :  { %153 = vmatprep.subr.bf16.mxu0 %v171_v0  ;;  %v167_v1 = vld [vmem:[%s224_s1] sm:$0xff]   ;;  %161 = vmatprep.mubr.msk.bf16.mxu0 %vm172_vm1, %v171_v0  ;;  %20 = vst.msk [vmem:[#allocation2] sm:$0xff] %vm19_vm0, %v171_v0  ;;  %21 = vst.msk [vmem:[#allocation2 + $0x8] sm:$0xff] %vm19_vm0, %v171_v0  ;;  %v168_v2 = vld [vmem:[%s224_s1 + $0x8] sm:$0xff]   ;;  %vm131_vm3 = vcmask 257024  }
   0x2   :  { %154 = vmatpush3.bf16.msra.mxu0 %v167_v1  ;;  %v169_v3 = vld [vmem:[%s224_s1 + $0x10] sm:$0xff]   ;;  %v170_v4 = vld [vmem:[%s224_s1 + $0x18] sm:$0xff]   ;;  %v24_v5 = vld [vmem:[%s225_s0] sm:$0xff] }
   0x3   :  { %155 = vmatprep.subr.bf16.mxu0 %v171_v0  ;;  %v25_v6 = vld [vmem:[%s225_s0 + $0x8] sm:$0xff]  ;;  %v143_v16 = vld [vmem:[%s226_s2] ss:$0 sm:$0xff] }
   0x4   :  { %v26_v7 = vpack.c.bf16 %v25_v6, %v24_v5 }
   0x6   :  { %156 = vmatpush3.bf16.msra.mxu0 %v168_v2 }
   0x7   :  { %157 = vmatprep.subr.bf16.mxu0 %v171_v0 }
   0x8   :  { %v22_v8 = vld [vmem:[#allocation2] sm:$0xff]  ;;  %v23_v10 = vld [vmem:[#allocation2 + $0x8] sm:$0xff] }
   0xa   :  { %158 = vmatpush3.bf16.msra.mxu0 %v169_v3 }
   0xb   :  { %159 = vmatprep.subr.bf16.mxu0 %v171_v0 }
   0xe   :  { %160 = vmatpush3.bf16.msra.mxu0 %v170_v4 }
  0x11   :  { %162 = vmatmul.mubr.msk.bf16.vlgmr.msra.gmra.mrb[0].mxu0 %vm59_vm2, %v26_v7 }
  0xe4   :  { %v97_v9 = vpop.f32.mrb[0].mxu0 }
  0xe5   :  { %v104_v11 = vadd.f32 %v97_v9, %v22_v8  ;;  %v163_v12 = vpop.f32.mrb[1].mxu0 }
  0xe6   :  { %v100_v13 = vpop.f32.mrb[2].mxu0 }
  0xe7   :  { %107 = vst.msk [vmem:[#allocation2] sm:$0xff] %vm19_vm0, %v104_v11  ;;  %v105_v14 = vadd.f32 %v100_v13, %v23_v10  ;;  %v164_v15 = vpop.f32.mrb[3].mxu0 }
  0xe9   :  { %108 = vst.msk [vmem:[#allocation2 + $0x8] sm:$0xff] %vm19_vm0, %v105_v14 }
  0xee   :  { %v112_v17 = vld [vmem:[#allocation2] sm:$0xff] }
  0xef   :  { %v121_v18 = vadd.f32 %v143_v16, %v112_v17 }
  0xf0   :  { %v113_v19 = vld [vmem:[#allocation2 + $0x8] sm:$0xff] }
  0xf1   :  { %v146_v20 = vpack.c.bf16 %v121_v18, %v121_v18  ;;  %v122_v21 = vadd.f32 %v143_v16, %v113_v19 }
  0xf3   :  { %132 = vst.msk [vmem:[%s227_s3] sm:$0xf] %vm131_vm3, %v146_v20  ;;  %v147_v22 = vpack.c.bf16 %v122_v21, %v122_v21 }
  0xf5   :  { %133 = vst.msk [vmem:[%s227_s3 + $0x4] sm:$0xf] %vm131_vm3, %v147_v22 }

// kernel: viper_forward.34
= control target key start
LH: loop header
LB: loop body
LE: loop exit
PB: predicated region body
PF: predicated region fallthrough
CT: control target
= control target key end

     0   :  { %vm19_vm0 = vcmask 31744   ;;  %v138_v0 = vmov 0.0   ;;  %vm139_vm1 = vmmov 0   ;;  %vm47_vm2 = vcmask 261120   ;;  %s208_s3 = inlined_call_operand.vmem [shape: f32[16,4], index: 3, kind: output, shape index: {}]   ;;  %s209_s1 = inlined_call_operand.vmem [shape: bf16[32,4], index: 1, kind: input, shape index: {}]   ;;  %s210_s0 = inlined_call_operand.vmem [shape: bf16[16,32], index: 0, kind: input, shape index: {}]   ;;  %s211_s2 = inlined_call_operand.vmem [shape: f32[1,4], index: 2, kind: input, shape index: {}]  }
   0x1   :  { %20 = vst.msk [vmem:[%s208_s3] sm:$0xff] %vm19_vm0, %v138_v0  ;;  %21 = vst.msk [vmem:[%s208_s3 + $0x8] sm:$0xff] %vm19_vm0, %v138_v0  ;;  %125 = vmatprep.subr.bf16.mxu0 %v138_v0  ;;  %v135_v1 = vld [vmem:[%s209_s1] sm:$0xff]   ;;  %129 = vmatprep.mubr.msk.bf16.mxu0 %vm139_vm1, %v138_v0  ;;  %v136_v2 = vld [vmem:[%s209_s1 + $0x8] sm:$0xff]  }
   0x2   :  { %126 = vmatpush3.bf16.msra.mxu0 %v135_v1  ;;  %v137_v3 = vld [vmem:[%s210_s0] sm:$0xff]  }
   0x3   :  { %127 = vmatprep.subr.bf16.mxu0 %v138_v0  ;;  %v121_v12 = vld [vmem:[%s211_s2] ss:$0 sm:$0xff] }
   0x6   :  { %128 = vmatpush3.bf16.msra.mxu0 %v136_v2 }
   0x8   :  { %v22_v4 = vld [vmem:[%s208_s3] sm:$0xff]  ;;  %v23_v6 = vld [vmem:[%s208_s3 + $0x8] sm:$0xff] }
   0x9   :  { %130 = vmatmul.mubr.msk.bf16.vlgmr.msra.gmra.mrb[0].mxu0 %vm47_vm2, %v137_v3 }
  0xdc   :  { %v85_v5 = vpop.f32.mrb[0].mxu0 }
  0xdd   :  { %v92_v7 = vadd.f32 %v85_v5, %v22_v4  ;;  %v131_v8 = vpop.f32.mrb[1].mxu0 }
  0xde   :  { %v88_v9 = vpop.f32.mrb[2].mxu0 }
  0xdf   :  { %95 = vst.msk [vmem:[%s208_s3] sm:$0xff] %vm19_vm0, %v92_v7  ;;  %v93_v10 = vadd.f32 %v88_v9, %v23_v6  ;;  %v132_v11 = vpop.f32.mrb[3].mxu0 }
  0xe1   :  { %96 = vst.msk [vmem:[%s208_s3 + $0x8] sm:$0xff] %vm19_vm0, %v93_v10 }
  0xe6   :  { %v100_v13 = vld [vmem:[%s208_s3] sm:$0xff] }
  0xe7   :  { %v109_v14 = vadd.f32 %v121_v12, %v100_v13 }
  0xe8   :  { %v101_v15 = vld [vmem:[%s208_s3 + $0x8] sm:$0xff] }
  0xe9   :  { %111 = vst.msk [vmem:[%s208_s3] sm:$0xff] %vm19_vm0, %v109_v14  ;;  %v110_v16 = vadd.f32 %v121_v12, %v101_v15 }
  0xeb   :  { %112 = vst.msk [vmem:[%s208_s3 + $0x8] sm:$0xff] %vm19_vm0, %v110_v16 }

// kernel: viper_forward.36
= control target key start
LH: loop header
LB: loop body
LE: loop exit
PB: predicated region body
PF: predicated region fallthrough
CT: control target
= control target key end

     0   :  { %v141_v0 = vmov 0.0   ;;  %vm142_vm0 = vmmov 0   ;;  %vm45_vm1 = vcmask 261120   ;;  %vm99_vm2 = vcmask 523264   ;;  %s143_s20 = smov 64   ;;  %s185_s1 = inlined_call_operand.vmem [shape: bf16[32,128], index: 1, kind: input, shape index: {}]   ;;  %s186_s0 = inlined_call_operand.vmem [shape: bf16[16,32], index: 0, kind: input, shape index: {}]   ;;  %s187_s2 = inlined_call_operand.vmem [shape: f32[16,64], index: 2, kind: output, shape index: {0}]   ;;  %s188_s3 = inlined_call_operand.vmem [shape: f32[16,64], index: 3, kind: output, shape index: {1}]  }
   0x1   :  { %127 = vmatprep.subr.bf16.mxu0 %v141_v0  ;;  %v138_v1 = vld [vmem:[%s185_s1] sm:$0xff]   ;;  %131 = vmatprep.mubr.msk.bf16.mxu0 %vm142_vm0, %v141_v0  ;;  %v139_v2 = vld [vmem:[%s185_s1 + $0x8] sm:$0xff]  }
   0x2   :  { %128 = vmatpush3.bf16.msra.mxu0 %v138_v1  ;;  %v140_v3 = vld [vmem:[%s186_s0] sm:$0xff]  }
   0x3   :  { %129 = vmatprep.subr.bf16.mxu0 %v141_v0 }
   0x6   :  { %130 = vmatpush3.bf16.msra.mxu0 %v139_v2 }
   0x9   :  { %132 = vmatmul.mubr.msk.bf16.vlgmr.msra.gmra.mrb[0].mxu0 %vm45_vm1, %v140_v3 }
  0xdc   :  { %v83_v4 = vpop.f32.mrb[0].mxu0 }
  0xdd   :  { %100 = vst.msk [vmem:[%s187_s2] sm:$0xff] %vm99_vm2, %v83_v4  ;;  %104 = vrot.lane.b32.xlu0 %v83_v4, %s143_s20  ;;  %v133_v5 = vpop.f32.mrb[1].mxu0 }
  0xde   :  { %v86_v6 = vpop.f32.mrb[2].mxu0 }
  0xdf   :  { %101 = vst.msk [vmem:[%s187_s2 + $0x8] sm:$0xff] %vm99_vm2, %v86_v6  ;;  %v134_v7 = vpop.f32.mrb[3].mxu0 }
  0xe1   :  { %106 = vrot.lane.b32.xlu0 %v86_v6, %s143_s20 }
 0x14f   :  { %v105_v8 = vpop.permute.xlu0 %104 }
 0x150   :  { %110 = vst.msk [vmem:[%s188_s3] sm:$0xff] %vm99_vm2, %v105_v8 }
 0x153   :  { %v107_v9 = vpop.permute.xlu0 %106 }
 0x154   :  { %111 = vst.msk [vmem:[%s188_s3 + $0x8] sm:$0xff] %vm99_vm2, %v107_v9 }

// kernel: viper_forward.57
= control target key start
LH: loop header
LB: loop body
LE: loop exit
PB: predicated region body
PF: predicated region fallthrough
CT: control target
= control target key end

     0   :  { %s249_s0 = inlined_call_operand.vmem [shape: bf16[16,32], index: 0, kind: input, shape index: {}]   ;;  %s250_s1 = inlined_call_operand.vmem [shape: f32[1,32], index: 1, kind: input, shape index: {}]   ;;  %s251_s2 = inlined_call_operand.vmem [shape: bf16[32,64], index: 2, kind: input, shape index: {}]   ;;  %s252_s3 = inlined_call_operand.vmem [shape: f32[1,64], index: 3, kind: input, shape index: {}]   ;;  %s253_s4 = inlined_call_operand.hbm [shape: f32[16,64], index: 4, kind: output, shape index: {}]  }
   0x1   :  { %v140_v0 = vld [vmem:[%s249_s0] sm:$0xff]  }
   0x2   :  { %v141_v1 = vunpack.c.l.bf16 %v140_v0  ;;  %v142_v2 = vunpack.c.h.bf16 %v140_v0 }
   0x3   :  { %9 = vsyncpa [#allocation3], 0  ;;  %vm25_vm0 = vcmask 261120   ;;  %v159_v7 = vld [vmem:[%s251_s2] sm:$0xff]   ;;  %v189_v8 = vmov 0.0   ;;  %v160_v9 = vld [vmem:[%s251_s2 + $0x8] sm:$0xff]   ;;  %v41_v13 = vlaneseq }
   0x4   :  { %v23_v3 = vmul.f32 %v141_v1, %v141_v1  ;;  %v24_v4 = vmul.f32 %v142_v2, %v142_v2  ;;  %146 = vmatprep.subr.bf16.mxu0 %v189_v8  ;;  %vm190_vm1 = vmmov 0   ;;  %v38_v16 = vld [vmem:[%s250_s1] sm:$0x1]  ;;  %s191_s23 = smov [#allocation2]   ;;  %vm116_vm2 = vcmask 523264  }
   0x5   :  { %147 = vmatpush3.bf16.msra.mxu0 %v159_v7  ;;  %150 = vmatprep.mubr.msk.bf16.mxu0 %vm190_vm1, %v189_v8  ;;  %v42_v15 = vshrl.u32 %v41_v13, 7  ;;  %v39_v17 = vmul.f32 5.656854, %v38_v16  ;;  %v135_v27 = vld [vmem:[%s252_s3] ss:$0 sm:$0xff]  ;;  %s124_s24 = sshll.u32 %s191_s23, 4  ;;  %s125_s24 = int_to_ptr.vmem [resolvable:$true] %s124_s24 }
   0x6   :  { %v26_v5 = vsel %vm25_vm0, %v23_v3, 0.0  ;;  %v29_v6 = vsel %vm25_vm0, %v24_v4, 0.0  ;;  %148 = vmatprep.subr.bf16.mxu0 %v189_v8  ;;  %s165_s1 = scalar_lea.vmem %s125_s24, 256  ;;  %p170_p1 = scmp.lt.s32.totalorder %s125_s24, %s125_s24 }
   0x7   :  { %27 = vadd.xlane.f32.xlu0 %v26_v5  ;;  %v43_v18 = vsub.s32 0, %v42_v15  ;;  %p166_p0 = scmp.ne.s32.totalorder %s125_s24, %s165_s1  ;;  %p171_p2 = scmp.lt.s32.totalorder %s165_s1, %s165_s1 }
   0x9   :  { %149 = vmatpush3.bf16.msra.mxu0 %v160_v9  ;;  %v44_v21 = vrot.slane %v39_v17, %v43_v18  ;;  %p172_p3 = por %p171_p2, %p170_p1 }
   0xb   :  { %30 = vadd.xlane.f32.xlu0 %v29_v6  ;;  %p173_p4 = pnand %p172_p3, %p166_p0 }
  0x94   :  { %v28_v10 = vpop.xlane.xlu0 %27 }
  0x95   :  { %v32_v11 = vmax.f32 %v28_v10, 1e-24 }
  0x97   :  { %161 = vrsqrt.f32 %v32_v11 }
  0x98   :  { %v31_v12 = vpop.xlane.xlu0 %30 }
  0x99   :  { %v33_v14 = vmax.f32 %v31_v12, 1e-24 }
  0x9b   :  { %163 = vrsqrt.f32 %v33_v14 }
  0xa1   :  { %v162_v19 = vpop.eup %161 }
  0xa2   :  { %v36_v20 = vmul.f32 %v162_v19, %v141_v1 }
  0xa4   :  { %v46_v24 = vmul.f32 %v44_v21, %v36_v20 }
  0xa5   :  { %v164_v22 = vpop.eup %163 }
  0xa6   :  { %v37_v23 = vmul.f32 %v164_v22, %v142_v2 }
  0xa8   :  { %v47_v25 = vmul.f32 %v44_v21, %v37_v23 }
  0xaa   :  { %v48_v26 = vpack.c.bf16 %v47_v25, %v46_v24 }
  0xac   :  { %151 = vmatmul.mubr.msk.bf16.vlgmr.msra.gmra.mrb[0].mxu0 %vm25_vm0, %v48_v26 }
 0x17f   :  { %v109_v28 = vpop.f32.mrb[0].mxu0 }
 0x180   :  { %v110_v29 = vadd.f32 %v135_v27, %v109_v28  ;;  %v152_v30 = vpop.f32.mrb[1].mxu0 }
 0x181   :  { %v112_v31 = vpop.f32.mrb[2].mxu0 }
 0x182   :  { %117 = vst.msk [vmem:[#allocation2] sm:$0xff] %vm116_vm2, %v110_v29  ;;  %v113_v32 = vadd.f32 %v135_v27, %v112_v31  ;;  %v153_v33 = vpop.f32.mrb[3].mxu0 }
 0x184   :  { %118 = vst.msk [vmem:[#allocation2 + $0x8] sm:$0xff] %vm116_vm2, %v113_v32 }
 0x185   :  { %176 = shalt.err (!%p173_p4)
}
 0x186   :  { %s177_s26 = scalar_lea.hbm %s253_s4, 256 }
 0x187   :  { %p178_p5 = scmp.ne.s32.totalorder %s253_s4, %s177_s26  ;;  %p181_p6 = scmp.lt.u32.totalorder %s177_s26, %s253_s4 }
 0x189   :  { %p183_p7 = pnand %p181_p6, %p178_p5 }
 0x18b   :  { %186 = shalt.err (!%p183_p7)
}
 0x18c   :  { %s192_s5 = smov 128   ;;  %s193_s6 = smov 8  }
 0x18d   :  { %130 = dma.vmem_to_hbm [thread:$0]  %s125_s24, 256, %s253_s4, [#allocation3], %s192_s5, %s192_s5, %s193_s6  }
 0x18e   :  { %187 = dma.done.wait [#allocation3], 256  }
 0x18f   :  { %188 = vsyncadd [#allocation3], 4294967040 }
 0x190   :  { %134 = vsyncpa [#allocation3], 1 }

// kernel: viper_forward.35
= control target key start
LH: loop header
LB: loop body
LE: loop exit
PB: predicated region body
PF: predicated region fallthrough
CT: control target
= control target key end

     0   :  { %s1062_s21 = smov 0   ;;  %s1064_s22 = smov 0   ;;  %s1156_s0 = inlined_call_operand.vmem [shape: bf16[16,32], index: 0, kind: input, shape index: {}]   ;;  %s1157_s1 = inlined_call_operand.vmem [shape: f32[4,16,1], index: 1, kind: input, shape index: {}]   ;;  %s1158_s2 = inlined_call_operand.vmem [shape: bf16[4,32,128], index: 2, kind: input, shape index: {}]   ;;  %s1159_s3 = inlined_call_operand.vmem [shape: f32[4,1,128], index: 3, kind: input, shape index: {}]   ;;  %s1160_s4 = inlined_call_operand.vmem [shape: bf16[4,128,32], index: 4, kind: input, shape index: {}]   ;;  %s1161_s5 = inlined_call_operand.vmem [shape: f32[4,1,32], index: 5, kind: input, shape index: {}]   ;;  %s1162_s6 = inlined_call_operand.vmem [shape: bf16[16,32], index: 6, kind: output, shape index: {}]  }
   0x1   :  { %s1066_s23 = smov 0  }
   0x2 LB: > { %s31_s24 = sadd.s32 1, %s1017_s22  ;;  %p874_p0 = scmp.ge.s32.totalorder %s1021_s23, 1  ;;  %s1021_s23 = sphi %s1066_s23, %s16_s23   ;;  %s1017_s22 = sphi %s1064_s22, %s1164_s22   ;;  %s1013_s21 = sphi %s1062_s21, %s1163_s21  }
   0x3   : > { %p33_p1 = scmp.ge.s32.totalorder %s31_s24, 4  ;;  %p302_p2 = scmp.lt.s32.totalorder %s1021_s23, 5 }
   0x5   : > { %s1166_s24 = smov (%p33_p1, %s31_s24), 0  ;;  %p303_p3 = pnand %p874_p0, %p302_p2 }
   0x6   : > { %p374_p4 = scmp.lt.s32.totalorder (!%p303_p3), %s1013_s21, 3  ;;  %p417_p5 = scmp.eq.s32.totalorder (!%p303_p3), %s1013_s21, 0 }
   0x7   : > { %306 = sbr.rel (%p303_p3) target bundleno = 526 (0x20e), region = 44 }
   0xe   : > { %s1085_s25 = scalar_select %p374_p4, %s1013_s21, 3 }
   0xf   : > { %422 = sbr.rel (!%p417_p5) target bundleno = 22 (0x16), region = 48  ;;  %vm423_vm0 = vcmask (%p417_p5), 261120   ;;  %v1023_v0 = vmov (%p417_p5), 0.0  }
  0x10   : > { %s903_s26 = sshll.u32 %s1085_s25, 4  ;;  %s396_s29 = scalar_lea.vmem %s1159_s3, %s1085_s25  ;;  %424 = vst.msk [vmem:[#allocation2] sm:$0xff] (%p417_p5), %vm423_vm0, %v1023_v0  ;;  %425 = vst.msk [vmem:[#allocation2 + $0x8] sm:$0xff] (%p417_p5), %vm423_vm0, %v1023_v0 }
  0x11   : > { %s1095_s8 = scalar_lea.vmem %s1157_s1, %s903_s26  ;;  %s390_s11 = scalar_lea.vmem %s1158_s2, %s903_s26 }
  0x12   : > { %s905_s12 = sshll.u32 %s1085_s25, 6  ;;  %s409_s15 = scalar_lea.vmem %s1161_s5, %s1085_s25 }
  0x13   : > { %s1108_s18 = scalar_lea.vmem %s1160_s4, %s905_s12 }
  0x16 PF: > { %v980_v1 = vld [vmem:[%s390_s11] sm:$0xff]   ;;  %v1024_v2 = vmov 0.0   ;;  %v981_v3 = vld [vmem:[%s390_s11 + $0x8] sm:$0xff]   ;;  %vm1025_vm1 = vmmov 0   ;;  %vm458_vm2 = vcmask 261120   ;;  %v985_v7 = vld [vmem:[%s1108_s18 + $0x10] sm:$0xff]  }
  0x17   : > { %922 = vmatprep.subr.bf16.mxu0 %v1024_v2  ;;  %930 = vmatprep.subr.bf16.mxu1 %v1024_v2  ;;  %v982_v4 = vld [vmem:[%s1156_s0] sm:$0xff]   ;;  %v984_v6 = vld [vmem:[%s1108_s18 + $0x8] sm:$0xff]   ;;  %v986_v8 = vld [vmem:[%s1108_s18 + $0x18] sm:$0xff]   ;;  %v1026_v14 = vmov 0   ;;  %p709_p6 = scmp.eq.s32.totalorder %s1013_s21, 3 }
  0x18   : > { %923 = vmatpush3.bf16.msra.mxu0 %v980_v1  ;;  %926 = vmatprep.mubr.msk.bf16.mxu0 %vm1025_vm1, %v1024_v2  ;;  %v983_v5 = vld [vmem:[%s1108_s18] sm:$0xff]   ;;  %v988_v10 = vld [vmem:[%s1108_s18 + $0x28] sm:$0xff]   ;;  %v989_v11 = vld [vmem:[%s1108_s18 + $0x30] sm:$0xff]   ;;  %vm724_vm5 = vcmask (%p709_p6), 257024  }
  0x19   : > { %924 = vmatprep.subr.bf16.mxu0 %v1024_v2  ;;  %946 = vmatprep.mubr.msk.bf16.mxu1 %vm1025_vm1, %v1024_v2  ;;  %v987_v9 = vld [vmem:[%s1108_s18 + $0x20] sm:$0xff]   ;;  %v990_v12 = vld [vmem:[%s1108_s18 + $0x38] sm:$0xff]   ;;  %v427_v15 = vld [vmem:[%s1095_s8 + $0x8] sm:$0xff] }
  0x1a   : > { %931 = vmatpush3.bf16.msra.mxu1 %v983_v5  ;;  %v426_v13 = vld [vmem:[%s1095_s8] sm:$0xff]  ;;  %978 = vset.pattern.permute.xlu0 %v1026_v14 }
  0x1b   : > { %932 = vmatprep.subr.bf16.mxu1 %v1024_v2  ;;  %979 = vset.pattern.permute.xlu1 %v1026_v14  ;;  %v882_v16 = vld [vmem:[%s396_s29] ss:$0 sm:$0xff] }
  0x1c   : > { %925 = vmatpush3.bf16.msra.mxu0 %v981_v3  ;;  %671 = vperm.xlu0 %978, %v426_v13  }
  0x1d   : > { %695 = vperm.xlu1 %979, %v426_v13  }
  0x1e   : > { %933 = vmatpush3.bf16.msra.mxu1 %v984_v6 }
  0x1f   : > { %927 = vmatmul.mubr.msk.bf16.vlgmr.msra.gmra.mrb[0].mxu0 %vm458_vm2, %v982_v4  ;;  %934 = vmatprep.subr.bf16.mxu1 %v1024_v2 }
  0x20   : > { %676 = vperm.xlu0 %978, %v427_v15  }
  0x21   : > { %700 = vperm.xlu1 %979, %v427_v15   ;;  %v667_v15 = vld [vmem:[#allocation2 + $0x8] sm:$0xff] }
  0x22   : > { %935 = vmatpush3.bf16.msra.mxu1 %v985_v7 }
  0x23   : > { %936 = vmatprep.subr.bf16.mxu1 %v1024_v2 }
  0x26   : > { %937 = vmatpush3.bf16.msra.mxu1 %v986_v8 }
  0x27   : > { %938 = vmatprep.subr.bf16.mxu1 %v1024_v2 }
  0x2a   : > { %939 = vmatpush3.bf16.msra.mxu1 %v987_v9 }
  0x2b   : > { %940 = vmatprep.subr.bf16.mxu1 %v1024_v2 }
  0x2e   : > { %941 = vmatpush3.bf16.msra.mxu1 %v988_v10  ;;  %v895_v10 = vld [vmem:[%s409_s15] ss:$0 sm:$0xff] }
  0x2f   : > { %942 = vmatprep.subr.bf16.mxu1 %v1024_v2 }
  0x32   : > { %943 = vmatpush3.bf16.msra.mxu1 %v989_v11  ;;  %v666_v11 = vld [vmem:[#allocation2] sm:$0xff] }
  0x33   : > { %944 = vmatprep.subr.bf16.mxu1 %v1024_v2 }
  0x36   : > { %945 = vmatpush3.bf16.msra.mxu1 %v990_v12 }
  0x9b   : > { %v672_v12 = vpop.permute.xlu0 %671 }
  0x9c   : > { %v685_v13 = vmul.f32 %v895_v10, %v672_v12 }
  0x9e   : > { %v687_v14 = vadd.f32 %v685_v13, %v666_v11 }
  0xa0   : > { %689 = vst.msk [vmem:[#allocation2] sm:$0xff] %vm458_vm2, %v687_v14 }
  0xf2   : > { %v496_v17 = vpop.f32.mrb[0].mxu0 }
  0xf3   : > { %v497_v18 = vadd.f32 %v882_v16, %v496_v17  ;;  %v928_v19 = vpop.f32.mrb[1].mxu0 }
  0xf4   : > { %v499_v20 = vpop.f32.mrb[2].mxu0  ;;  %v696_v19 = vpop.permute.xlu1 %695 }
  0xf5   : > { %v505_v21 = vmul.f32 0.70710677, %v497_v18  ;;  %v500_v22 = vadd.f32 %v882_v16, %v499_v20  ;;  %v929_v23 = vpop.f32.mrb[3].mxu0  ;;  %v503_v4 = vmul.f32 0.5, %v497_v18  ;;  %v677_v16 = vpop.permute.xlu0 %676 }
  0xf6   : > { %v686_v17 = vmul.f32 %v895_v10, %v677_v16 }
  0xf7   : > { %v507_v24 = vand.u32 2147483647, %v505_v21  ;;  %v506_v25 = vmul.f32 0.70710677, %v500_v22  ;;  %vm547_vm3 = vcmp.ge.f32.partialorder %v505_v21, 0.0  ;;  %v504_v5 = vmul.f32 0.5, %v500_v22 }
  0xf8   : > { %v688_v18 = vadd.f32 %v686_v17, %v667_v15  ;;  %v701_v23 = vpop.permute.xlu1 %700 }
  0xf9   : > { %v509_v26 = vmul.f32 0.3275911, %v507_v24  ;;  %v508_v27 = vand.u32 2147483647, %v506_v25  ;;  %v535_v31 = vsub.f32 0.0, %v507_v24  ;;  %vm548_vm4 = vcmp.ge.f32.partialorder %v506_v25, 0.0 }
  0xfa   : > { %690 = vst.msk [vmem:[#allocation2 + $0x8] sm:$0xff] %vm458_vm2, %v688_v18 }
  0xfb   : > { %v511_v28 = vadd.f32 1.0, %v509_v26  ;;  %v510_v29 = vmul.f32 0.3275911, %v508_v27  ;;  %v536_v32 = vsub.f32 0.0, %v508_v27  ;;  %v537_v34 = vmul.f32 %v535_v31, %v507_v24  ;;  %v691_v24 = vld [vmem:[#allocation2] sm:$0xff] }
  0xfd   : > { %991 = vrcp.f32 %v511_v28  ;;  %v512_v30 = vadd.f32 1.0, %v510_v29  ;;  %v538_v38 = vmul.f32 %v536_v32, %v508_v27  ;;  %v539_v39 = vmul.f32 1.442695, %v537_v34 }
  0xff   : > { %993 = vrcp.f32 %v512_v30  ;;  %v541_v44 = vmul.f32 1.442695, %v538_v38 }
 0x100   : > { %995 = vpow2.f32 %v539_v39 }
 0x101   : > { %997 = vpow2.f32 %v541_v44  ;;  %v692_v29 = vld [vmem:[#allocation2 + $0x8] sm:$0xff] }
 0x107   : > { %v992_v33 = vpop.eup %991 }
 0x108   : > { %v517_v35 = vmul.f32 1.0614054, %v992_v33 }
 0x109   : > { %v994_v36 = vpop.eup %993 }
 0x10a   : > { %v519_v37 = vadd.f32 -1.4531521, %v517_v35  ;;  %v518_v40 = vmul.f32 1.0614054, %v994_v36  ;;  %v996_v55 = vpop.eup %995 }
 0x10b   : > { %v998_v59 = vpop.eup %997 }
 0x10c   : > { %v521_v41 = vmul.f32 %v992_v33, %v519_v37  ;;  %v520_v42 = vadd.f32 -1.4531521, %v518_v40 }
 0x10e   : > { %v523_v43 = vadd.f32 1.4214138, %v521_v41  ;;  %v522_v45 = vmul.f32 %v994_v36, %v520_v42 }
 0x110   : > { %v525_v46 = vmul.f32 %v992_v33, %v523_v43  ;;  %v524_v47 = vadd.f32 1.4214138, %v522_v45 }
 0x112   : > { %v527_v48 = vadd.f32 -0.28449672, %v525_v46  ;;  %v526_v49 = vmul.f32 %v994_v36, %v524_v47 }
 0x114   : > { %v529_v50 = vmul.f32 %v992_v33, %v527_v48  ;;  %v528_v51 = vadd.f32 -0.28449672, %v526_v49 }
 0x116   : > { %v531_v52 = vadd.f32 0.2548296, %v529_v50  ;;  %v530_v53 = vmul.f32 %v994_v36, %v528_v51 }
 0x118   : > { %v533_v54 = vmul.f32 %v992_v33, %v531_v52  ;;  %v532_v56 = vadd.f32 0.2548296, %v530_v53 }
 0x11a   : > { %v543_v57 = vmul.f32 %v996_v55, %v533_v54  ;;  %v534_v58 = vmul.f32 %v994_v36, %v532_v56 }
 0x11c   : > { %v545_v60 = vsub.f32 1.0, %v543_v57  ;;  %v544_v61 = vmul.f32 %v998_v59, %v534_v58 }
 0x11e   : > { %v549_v62 = vsub.f32 0.0, %v545_v60  ;;  %v546_v63 = vsub.f32 1.0, %v544_v61 }
 0x120   : > { %v551_v0 = vsel %vm547_vm3, %v545_v60, %v549_v62  ;;  %v550_v1 = vsub.f32 0.0, %v546_v63 }
 0x121   : > { %v553_v2 = vadd.f32 1.0, %v551_v0 }
 0x122   : > { %v552_v3 = vsel %vm548_vm4, %v546_v63, %v550_v1 }
 0x123   : > { %v554_v6 = vadd.f32 1.0, %v552_v3  ;;  %v555_v7 = vmul.f32 %v553_v2, %v503_v4 }
 0x125   : > { %v556_v8 = vmul.f32 %v554_v6, %v504_v5 }
 0x127   : > { %v557_v9 = vpack.c.bf16 %v556_v8, %v555_v7 }
 0x129   : > { %947 = vmatmul.mubr.bf16.vlgmr.msra.gmra.mrb[0].mxu1 %v557_v9 }
 0x1fc   : > { %v656_v20 = vpop.f32.mrb[0].mxu1 }
 0x1fd   : > { %v703_v21 = vmul.f32 %v696_v19, %v656_v20  ;;  %v948_v22 = vpop.f32.mrb[1].mxu1  ;;  %713 = sbr.rel (!%p709_p6) target bundleno = 526 (0x20e), region = 56 }
 0x1fe   : > { %v659_v25 = vpop.f32.mrb[2].mxu1 }
 0x1ff   : > { %v705_v26 = vadd.f32 %v703_v21, %v691_v24  ;;  %v704_v27 = vmul.f32 %v701_v23, %v659_v25  ;;  %v949_v28 = vpop.f32.mrb[3].mxu1 }
 0x201   : > { %707 = vst.msk [vmem:[#allocation2] sm:$0xff] %vm458_vm2, %v705_v26  ;;  %v706_v30 = vadd.f32 %v704_v27, %v692_v29 }
 0x203   : > { %708 = vst.msk [vmem:[#allocation2 + $0x8] sm:$0xff] %vm458_vm2, %v706_v30 }
 0x208   : > { %v714_v31 = vld [vmem:[#allocation2] sm:$0xff] }
 0x209   : > { %v908_v33 = vpack.c.bf16 %v714_v31, %v714_v31 }
 0x20a   : > { %v715_v32 = vld [vmem:[#allocation2 + $0x8] sm:$0xff] }
 0x20b   : > { %v909_v34 = vpack.c.bf16 %v715_v32, %v715_v32  ;;  %725 = vst.msk [vmem:[%s1162_s6] sm:$0xf] %vm724_vm5, %v908_v33 }
 0x20d   : > { %726 = vst.msk [vmem:[%s1162_s6 + $0x4] sm:$0xf] %vm724_vm5, %v909_v34 }
 0x20e PF: > { %s16_s23 = sadd.s32 1, %s1021_s23   ;;  %s1163_s21 = smov %s1017_s22 }
 0x20f   : > { %p13_p7 = scmp.ge.s32.totalorder %s16_s23, 6   ;;  %s1164_s22 = smov %s1166_s24 }
 0x211   :  { %15 = sbr.rel (!%p13_p7) target bundleno = 2 (0x2), region = 101 }

</bundles_post_ra>
